<compile_context>
chip_gen: v6e
topology: v6e:2x2x1
jax: 0.10.0
libtpu: 0.0.40
codegen_flags: <defaults>
</compile_context>

<pallas_src>
import jax
import jax.numpy as jnp
from jax.experimental import pallas as pl
from jax.experimental.pallas import tpu as pltpu


def _round_up(x, m):
    return ((x + m - 1) // m) * m


def _coh_kernel(a_ref, s_ref, w1a_ref, w1b_ref, b1_ref, w2_ref, b2_ref, out_ref):
    # a_ref, s_ref : (BM, D)  f32 activation tiles (anchor / sentence)
    # w1a_ref      : (D, H)   bf16  == W1[:D]   (anchor half of first layer)
    # w1b_ref      : (D, H)   bf16  == W1[D:]   (sentence half of first layer)
    # b1_ref       : (1, H)   f32
    # w2_ref       : (1, H)   f32   (W2 transposed to a lane-dense row)
    # b2_ref       : (1,)     f32   scalar bias in SMEM
    # out_ref      : (BM, 1)  f32   sigmoid scores
    a_bf = a_ref[...].astype(jnp.bfloat16)      # cast in VMEM, full MXU rate
    s_bf = s_ref[...].astype(jnp.bfloat16)
    h = jnp.dot(a_bf, w1a_ref[...], preferred_element_type=jnp.float32)
    h = h + jnp.dot(s_bf, w1b_ref[...], preferred_element_type=jnp.float32)
    h = h + b1_ref[...]
    h = jnp.maximum(h, 0.0)                                     # ReLU
    # Second "matmul" has N=1: do it on the VPU/XLU instead of the MXU.
    logits = jnp.sum(h * w2_ref[...], axis=-1, keepdims=True) + b2_ref[0]
    out_ref[...] = jax.nn.sigmoid(logits).astype(out_ref.dtype)


def coh_base_forward(anchor, sent, params, block_batch=256):
    """anchor, sent: (B, D) float32 -> scores (B, 1) float32."""
    w1a, w1b, b1, w2_row, b2 = params
    B, D = anchor.shape
    H = w1a.shape[1]

    # Batch tile: multiple of 16, capped at block_batch.
    BM = min(block_batch, _round_up(B, 16))
    Bp = _round_up(B, BM)
    if Bp != B:
        pad = Bp - B
        anchor = jnp.pad(anchor, ((0, pad), (0, 0)))
        sent = jnp.pad(sent, ((0, pad), (0, 0)))

    out = pl.pallas_call(
        _coh_kernel,
        out_shape=jax.ShapeDtypeStruct((Bp, 1), jnp.float32),
        grid_spec=pltpu.PrefetchScalarGridSpec(
            num_scalar_prefetch=0,
            grid=(Bp // BM,),
            in_specs=[
                pl.BlockSpec((BM, D), lambda i: (i, 0)),        # anchor tile (f32)
                pl.BlockSpec((BM, D), lambda i: (i, 0)),        # sent tile   (f32)
                pl.BlockSpec((D, H), lambda i: (0, 0)),         # w1a (VMEM resident)
                pl.BlockSpec((D, H), lambda i: (0, 0)),         # w1b (VMEM resident)
                pl.BlockSpec((1, H), lambda i: (0, 0)),         # b1
                pl.BlockSpec((1, H), lambda i: (0, 0)),         # w2 row
                pl.BlockSpec(memory_space=pltpu.MemorySpace.SMEM),  # b2 scalar
            ],
            out_specs=pl.BlockSpec((BM, 1), lambda i: (i, 0)),
        ),
        compiler_params=pltpu.CompilerParams(
            dimension_semantics=("parallel",),      # batch tiles -> both TCs on v7x
            vmem_limit_bytes=32 * 1024 * 1024,      # explicit; fits v7x's 64 MiB VMEM
        ),
    )(anchor, sent, w1a, w1b, b1, w2_row, b2)

    return out[:B]


def init_params(embed_dim, key):
    """Deterministic synthetic parameters matching MLP_Discriminator(768).

    Weights are stored in the layout the kernel consumes:
      w1a, w1b : (D, H) bf16   (split halves of the (2D, H) first layer)
      b1       : (1, H) f32
      w2_row   : (1, H) f32    (transpose of the (H, 1) scoring layer)
      b2       : (1,)   f32
    """
    k1, k2 = jax.random.split(key)
    d_in = 2 * embed_dim
    hidden = embed_dim
    w1 = jax.random.normal(k1, (d_in, hidden), jnp.float32) * (1.0 / jnp.sqrt(d_in))
    w2 = jax.random.normal(k2, (hidden, 1), jnp.float32) * (1.0 / jnp.sqrt(hidden))
    w1a = w1[:embed_dim].astype(jnp.bfloat16)
    w1b = w1[embed_dim:].astype(jnp.bfloat16)
    b1 = jnp.zeros((1, hidden), jnp.float32)
    w2_row = w2.T.astype(jnp.float32)               # (1, H)
    b2 = jnp.zeros((1,), jnp.float32)
    return w1a, w1b, b1, w2_row, b2


def reference_forward(anchor, sent, params):
    """Pure-JAX reference (same bf16-quantized operands, f32 accumulation)."""
    w1a, w1b, b1, w2_row, b2 = params
    a = anchor.astype(jnp.bfloat16).astype(jnp.float32)
    s = sent.astype(jnp.bfloat16).astype(jnp.float32)
    h = a @ w1a.astype(jnp.float32) + s @ w1b.astype(jnp.float32) + b1
    h = jnp.maximum(h, 0.0)
    logits = jnp.sum(h * w2_row, axis=-1, keepdims=True) + b2[0]
    return jax.nn.sigmoid(logits)


if __name__ == "__main__":
    EMBED_DIM = 768     # fixed by Coh_base.__init__
    BATCH = 8           # small test batch

    key = jax.random.PRNGKey(0)
    k_anchor, k_sent, k_params = jax.random.split(key, 3)

    anchor = jax.random.normal(k_anchor, (BATCH, EMBED_DIM), jnp.float32)
    sent = jax.random.normal(k_sent, (BATCH, EMBED_DIM), jnp.float32)
    params = init_params(EMBED_DIM, k_params)

    scores = coh_base_forward(anchor, sent, params)
    scores = jax.block_until_ready(scores)

    ref = reference_forward(anchor, sent, params)
    assert scores.shape == (BATCH, 1)
    assert jnp.allclose(scores, ref, atol=1e-3, rtol=1e-3), (
        f"max abs err {jnp.max(jnp.abs(scores - ref))}"
    )

    print("KERNEL_OK")
</pallas_src>

<mosaic_0001>
module attributes {stable_mosaic.version = 11 : i64} {
  func.func @_coh_kernel(%arg0: i32, %arg1: memref<16x768xf32, #tpu.memory_space<vmem>>, %arg2: memref<16x768xf32, #tpu.memory_space<vmem>>, %arg3: memref<768x768xbf16, #tpu.memory_space<vmem>>, %arg4: memref<768x768xbf16, #tpu.memory_space<vmem>>, %arg5: memref<1x768xf32, #tpu.memory_space<vmem>>, %arg6: memref<1x768xf32, #tpu.memory_space<vmem>>, %arg7: memref<1xf32, #tpu.memory_space<smem>>, %arg8: memref<16x1xf32, #tpu.memory_space<vmem>>) attributes {dimension_semantics = [#tpu.dimension_semantics<parallel>], iteration_bounds = array<i64: 1>, scalar_prefetch = 0 : i64, scratch_operands = 0 : i64, tpu.core_type = #tpu.core_type<tc>, window_params = [{transform_indices = @transform_0, window_bounds = array<i64: 16, 768>}, {transform_indices = @transform_1, window_bounds = array<i64: 16, 768>}, {pipeline_mode = #tpu.pipeline_mode<synchronous>, transform_indices = @transform_2, window_bounds = array<i64: 768, 768>}, {pipeline_mode = #tpu.pipeline_mode<synchronous>, transform_indices = @transform_3, window_bounds = array<i64: 768, 768>}, {pipeline_mode = #tpu.pipeline_mode<synchronous>, transform_indices = @transform_4, window_bounds = array<i64: 1, 768>}, {pipeline_mode = #tpu.pipeline_mode<synchronous>, transform_indices = @transform_5, window_bounds = array<i64: 1, 768>}, {transform_indices = @transform_6, window_bounds = array<i64: 1>}, {transform_indices = @transform_7, window_bounds = array<i64: 16, 1>}]} {
    %c0 = arith.constant 0 : index
    %c0_0 = arith.constant 0 : index
    %0 = vector.load %arg1[%c0, %c0_0] : memref<16x768xf32, #tpu.memory_space<vmem>>, vector<16x768xf32>
    %1 = arith.truncf %0 : vector<16x768xf32> to vector<16x768xbf16>
    %c0_1 = arith.constant 0 : index
    %c0_2 = arith.constant 0 : index
    %2 = vector.load %arg2[%c0_1, %c0_2] : memref<16x768xf32, #tpu.memory_space<vmem>>, vector<16x768xf32>
    %3 = arith.truncf %2 : vector<16x768xf32> to vector<16x768xbf16>
    %c0_3 = arith.constant 0 : index
    %c0_4 = arith.constant 0 : index
    %4 = vector.load %arg3[%c0_3, %c0_4] : memref<768x768xbf16, #tpu.memory_space<vmem>>, vector<768x768xbf16>
    %cst = arith.constant dense<0.000000e+00> : vector<16x768xf32>
    %5 = tpu.matmul %1, %4, %cst {dimension_numbers = #tpu.dot_dimension_numbers<[1], [0], [0], [1], [0, 0, 1, 1], [], []>} : vector<16x768xbf16>, vector<768x768xbf16>, vector<16x768xf32> -> vector<16x768xf32>
    %c0_5 = arith.constant 0 : index
    %c0_6 = arith.constant 0 : index
    %6 = vector.load %arg4[%c0_5, %c0_6] : memref<768x768xbf16, #tpu.memory_space<vmem>>, vector<768x768xbf16>
    %cst_7 = arith.constant dense<0.000000e+00> : vector<16x768xf32>
    %7 = tpu.matmul %3, %6, %cst_7 {dimension_numbers = #tpu.dot_dimension_numbers<[1], [0], [0], [1], [0, 0, 1, 1], [], []>} : vector<16x768xbf16>, vector<768x768xbf16>, vector<16x768xf32> -> vector<16x768xf32>
    %8 = arith.addf %5, %7 : vector<16x768xf32>
    %c0_8 = arith.constant 0 : index
    %c0_9 = arith.constant 0 : index
    %9 = vector.load %arg5[%c0_8, %c0_9] : memref<1x768xf32, #tpu.memory_space<vmem>>, vector<1x768xf32>
    %10 = vector.broadcast %9 : vector<1x768xf32> to vector<16x768xf32>
    %11 = arith.addf %8, %10 : vector<16x768xf32>
    %cst_10 = arith.constant 0.000000e+00 : f32
    %12 = vector.broadcast %cst_10 : f32 to vector<16x768xf32>
    %13 = arith.maximumf %11, %12 : vector<16x768xf32>
    %c0_11 = arith.constant 0 : index
    %c0_12 = arith.constant 0 : index
    %14 = vector.load %arg6[%c0_11, %c0_12] : memref<1x768xf32, #tpu.memory_space<vmem>>, vector<1x768xf32>
    %15 = vector.broadcast %14 : vector<1x768xf32> to vector<16x768xf32>
    %16 = arith.mulf %13, %15 : vector<16x768xf32>
    %cst_13 = arith.constant dense<0.000000e+00> : vector<16xf32>
    %17 = vector.multi_reduction <add>, %16, %cst_13 [1] : vector<16x768xf32> to vector<16xf32>
    %18 = vector.shape_cast %17 : vector<16xf32> to vector<16x1xf32>
    %c0_14 = arith.constant 0 : index
    %19 = memref.load %arg7[%c0_14] : memref<1xf32, #tpu.memory_space<smem>>
    %20 = vector.broadcast %19 : f32 to vector<16x1xf32>
    %21 = arith.addf %18, %20 : vector<16x1xf32>
    %22 = arith.negf %21 : vector<16x1xf32>
    %23 = math.exp %22 : vector<16x1xf32>
    %cst_15 = arith.constant 1.000000e+00 : f32
    %24 = vector.broadcast %cst_15 : f32 to vector<16x1xf32>
    %25 = arith.addf %24, %23 : vector<16x1xf32>
    %26 = arith.divf %24, %25 : vector<16x1xf32>
    %c0_16 = arith.constant 0 : index
    %c0_17 = arith.constant 0 : index
    %27 = vector.load %arg8[%c0_16, %c0_17] : memref<16x1xf32, #tpu.memory_space<vmem>>, vector<16x1xf32>
    tpu.vector_store %arg8[%c0_16, %c0_17], %26 {strides = array<i32>} : memref<16x1xf32, #tpu.memory_space<vmem>>, vector<16x1xf32>,
    return
  }
  func.func @transform_0(%arg0: i32) -> (i32, i32) {
    %c0_i32 = arith.constant 0 : i32
    %c0_i32_0 = arith.constant 0 : i32
    return %arg0, %c0_i32 : i32, i32
  }
  func.func @transform_1(%arg0: i32) -> (i32, i32) {
    %c0_i32 = arith.constant 0 : i32
    %c0_i32_0 = arith.constant 0 : i32
    return %arg0, %c0_i32 : i32, i32
  }
  func.func @transform_2(%arg0: i32) -> (i32, i32) {
    %c0_i32 = arith.constant 0 : i32
    %c0_i32_0 = arith.constant 0 : i32
    %c0_i32_1 = arith.constant 0 : i32
    return %c0_i32, %c0_i32_0 : i32, i32
  }
  func.func @transform_3(%arg0: i32) -> (i32, i32) {
    %c0_i32 = arith.constant 0 : i32
    %c0_i32_0 = arith.constant 0 : i32
    %c0_i32_1 = arith.constant 0 : i32
    return %c0_i32, %c0_i32_0 : i32, i32
  }
  func.func @transform_4(%arg0: i32) -> (i32, i32) {
    %c0_i32 = arith.constant 0 : i32
    %c0_i32_0 = arith.constant 0 : i32
    %c0_i32_1 = arith.constant 0 : i32
    return %c0_i32, %c0_i32_0 : i32, i32
  }
  func.func @transform_5(%arg0: i32) -> (i32, i32) {
    %c0_i32 = arith.constant 0 : i32
    %c0_i32_0 = arith.constant 0 : i32
    %c0_i32_1 = arith.constant 0 : i32
    return %c0_i32, %c0_i32_0 : i32, i32
  }
  func.func @transform_6(%arg0: i32) -> i32 {
    %c0_i32 = arith.constant 0 : i32
    %c0_i32_0 = arith.constant 0 : i32
    return %c0_i32 : i32
  }
  func.func @transform_7(%arg0: i32) -> (i32, i32) {
    %c0_i32 = arith.constant 0 : i32
    %c0_i32_0 = arith.constant 0 : i32
    return %arg0, %c0_i32 : i32, i32
  }
}

</mosaic_0001>

<bundles_post_ra>
// kernel: tpu_custom_call.1
= control target key start
LH: loop header
LB: loop body
LE: loop exit
PB: predicated region body
PF: predicated region fallthrough
CT: control target
= control target key end

     0   :  { %13 = vsyncpa [#allocation4], 0  ;;  %s6303_s0 = inlined_call_operand.hbm [shape: f32[16,768], index: 0, kind: input, shape index: {}]   ;;  %s6304_s1 = inlined_call_operand.hbm [shape: f32[16,768], index: 1, kind: input, shape index: {}]   ;;  %s6305_s2 = inlined_call_operand.hbm [shape: bf16[768,768], index: 2, kind: input, shape index: {}]   ;;  %s6306_s3 = inlined_call_operand.hbm [shape: bf16[768,768], index: 3, kind: input, shape index: {}]   ;;  %s6307_s4 = inlined_call_operand.hbm [shape: f32[1,768], index: 4, kind: input, shape index: {}]   ;;  %s6308_s5 = inlined_call_operand.hbm [shape: f32[1,768], index: 5, kind: input, shape index: {}]   ;;  %s6309_s6 = inlined_call_operand.<no memory space> [shape: f32[1], index: 6, kind: input, shape index: {}]   ;;  %s6310_s7 = inlined_call_operand.vmem [shape: f32[16,1], index: 7, kind: output, shape index: {}]  }
   0x1   :  { %14 = vsyncpa [#allocation6], 0 }
   0x2   :  { %15 = vsyncpa [#allocation9], 0 }
   0x3   :  { %16 = vsyncpa [#allocation12], 0  ;;  %s6100_s24 = smov [#allocation5]  }
   0x4   :  { %s34_s25 = sshll.u32 %s6100_s24, 4  ;;  %s35_s25 = int_to_ptr.vmem [resolvable:$true] %s34_s25 }
   0x5   :  { %s5980_s26 = scalar_lea.vmem %s35_s25, 1536  ;;  %p5985_p1 = scmp.lt.s32.totalorder %s35_s25, %s35_s25 }
   0x6   :  { %p5981_p0 = scmp.ne.s32.totalorder %s35_s25, %s5980_s26  ;;  %p5986_p2 = scmp.lt.s32.totalorder %s5980_s26, %s5980_s26 }
   0x8   :  { %p5987_p3 = por %p5986_p2, %p5985_p1 }
   0xa   :  { %p5988_p4 = pnand %p5987_p3, %p5981_p0 }
   0xc   :  { %5991 = shalt.err (!%p5988_p4)
}
   0xd   :  { %s6101_s27 = smov 768   ;;  %s6102_s28 = smov 48  }
   0xe   :  { %40 = dma.hbm_to_vmem [thread:$0]  %s6304_s1, 1536, %s35_s25, [#allocation6], %s6101_s27, %s6101_s27, %s6102_s28  }
   0xf   :  { %s6103_s8 = smov [#allocation8]   ;;  %s6104_s10 = smov [#allocation3]  }
  0x10   :  { %s58_s9 = sshll.u32 %s6103_s8, 4  ;;  %s22_s11 = sshll.u32 %s6104_s10, 4  ;;  %s59_s9 = int_to_ptr.vmem [resolvable:$true] %s58_s9  ;;  %s23_s11 = int_to_ptr.vmem [resolvable:$true] %s22_s11 }
  0x11   :  { %s6000_s12 = scalar_lea.vmem %s59_s9, 36864  ;;  %p6005_p6 = scmp.lt.s32.totalorder %s59_s9, %s59_s9 }
  0x12   :  { %p6001_p5 = scmp.ne.s32.totalorder %s59_s9, %s6000_s12  ;;  %p6006_p7 = scmp.lt.s32.totalorder %s6000_s12, %s6000_s12 }
  0x14   :  { %p6007_p8 = por %p6006_p7, %p6005_p6 }
  0x16   :  { %p6008_p9 = pnand %p6007_p8, %p6001_p5 }
  0x18   :  { %6011 = shalt.err (!%p6008_p9)
}
  0x19   :  { %s6105_s13 = smov 384   ;;  %s6106_s14 = smov 24  }
  0x1a   :  { %64 = dma.hbm_to_vmem [thread:$0]  %s6306_s3, 36864, %s59_s9, [#allocation9], %s6105_s13, %s6105_s13, %s6106_s14  }
  0x1b   :  { %s6020_s1 = scalar_lea.vmem %s23_s11, 1536  ;;  %p6025_p11 = scmp.lt.s32.totalorder %s23_s11, %s23_s11 }
  0x1c   :  { %p6021_p10 = scmp.ne.s32.totalorder %s23_s11, %s6020_s1  ;;  %p6026_p12 = scmp.lt.s32.totalorder %s6020_s1, %s6020_s1 }
  0x1e   :  { %p6027_p13 = por %p6026_p12, %p6025_p11 }
  0x20   :  { %p6028_p0 = pnand %p6027_p13, %p6021_p10 }
  0x22   :  { %6031 = shalt.err (!%p6028_p0)
}
  0x23   :  { %28 = dma.hbm_to_vmem [thread:$0]  %s6303_s0, 1536, %s23_s11, [#allocation4], %s6101_s27, %s6101_s27, %s6102_s28  }
  0x24   :  { %s6107_s19 = smov [#allocation7]   ;;  %s6108_s21 = smov [#allocation10]  }
  0x25   :  { %s46_s20 = sshll.u32 %s6107_s19, 4  ;;  %s71_s22 = sshll.u32 %s6108_s21, 4  ;;  %s47_s20 = int_to_ptr.vmem [resolvable:$true] %s46_s20  ;;  %s72_s22 = int_to_ptr.vmem [resolvable:$true] %s71_s22 }
  0x26   :  { %s6040_s23 = scalar_lea.vmem %s47_s20, 36864  ;;  %p6045_p2 = scmp.lt.s32.totalorder %s47_s20, %s47_s20 }
  0x27   :  { %p6041_p1 = scmp.ne.s32.totalorder %s47_s20, %s6040_s23  ;;  %p6046_p3 = scmp.lt.s32.totalorder %s6040_s23, %s6040_s23 }
  0x29   :  { %p6047_p4 = por %p6046_p3, %p6045_p2 }
  0x2b   :  { %p6048_p5 = pnand %p6047_p4, %p6041_p1 }
  0x2d   :  { %6051 = shalt.err (!%p6048_p5)
}
  0x2e   :  { %52 = dma.hbm_to_vmem [thread:$0]  %s6305_s2, 36864, %s47_s20, [#allocation6], %s6105_s13, %s6105_s13, %s6106_s14  }
  0x2f   :  { %s6060_s25 = scalar_lea.vmem %s72_s22, 96  ;;  %p6065_p7 = scmp.lt.s32.totalorder %s72_s22, %s72_s22 }
  0x30   :  { %p6061_p6 = scmp.ne.s32.totalorder %s72_s22, %s6060_s25  ;;  %p6066_p8 = scmp.lt.s32.totalorder %s6060_s25, %s6060_s25 }
  0x32   :  { %p6067_p9 = por %p6066_p8, %p6065_p7 }
  0x34   :  { %p6068_p10 = pnand %p6067_p9, %p6061_p6 }
  0x36   :  { %6071 = shalt.err (!%p6068_p10)
}
  0x37   :  { %74 = dma.hbm_to_vmem [thread:$0]  %s6307_s4, 96, %s72_s22, [#allocation9]  }
  0x38   :  { %s6109_s27 = smov [#allocation11]  }
  0x39   :  { %s81_s28 = sshll.u32 %s6109_s27, 4  ;;  %s82_s28 = int_to_ptr.vmem [resolvable:$true] %s81_s28 }
  0x3a   :  { %s6080_s29 = scalar_lea.vmem %s82_s28, 96  ;;  %p6085_p12 = scmp.lt.s32.totalorder %s82_s28, %s82_s28 }
  0x3b   :  { %p6081_p11 = scmp.ne.s32.totalorder %s82_s28, %s6080_s29  ;;  %p6086_p13 = scmp.lt.s32.totalorder %s6080_s29, %s6080_s29 }
  0x3d   :  { %p6087_p0 = por %p6086_p13, %p6085_p12 }
  0x3f   :  { %p6088_p1 = pnand %p6087_p0, %p6081_p11 }
  0x41   :  { %6091 = shalt.err (!%p6088_p1)
}
  0x42   :  { %84 = dma.hbm_to_vmem [thread:$0]  %s6308_s5, 96, %s82_s28, [#allocation12]  }
  0x43   :  { %6092 = dma.done.wait [#allocation4], 1536  }
  0x44   :  { %6093 = vsyncadd [#allocation4], 4294965760 }
  0x45   :  { %6094 = dma.done.wait [#allocation6], 38400  }
  0x46   :  { %6095 = vsyncadd [#allocation6], 4294928896 }
  0x47   :  { %6096 = dma.done.wait [#allocation9], 36960  }
  0x48   :  { %6097 = vsyncadd [#allocation9], 4294930336 }
  0x49   :  { %6098 = dma.done.wait [#allocation12], 96  }
  0x4a   :  { %6099 = vsyncadd [#allocation12], 4294967200  ;;  %v5100_v0 = vld [vmem:[#allocation8 + $0x154] ss:$24 sps:$4 sm:$0xff]   ;;  %v5104_v2 = vld [vmem:[#allocation8 + $0x150] ss:$24 sps:$4 sm:$0xff]  }
  0x4b   :  { %v5102_v1 = vld [vmem:[#allocation8 + $0x454] ss:$24 sps:$4 sm:$0xff]   ;;  %2157 = vmatprep.subr.bf16.mxu0 %v5100_v0  ;;  %v5105_v3 = vld [vmem:[#allocation8 + $0x450] ss:$24 sps:$4 sm:$0xff]   ;;  %v5106_v4 = vld [vmem:[#allocation8 + $0x124] ss:$24 sps:$4 sm:$0xff]  }
  0x4c   :  { %2200 = vmatprep.subr.bf16.mxu1 %v5102_v1  ;;  %2158 = vmatpush1.bf16.msra.mxu0 %v5104_v2  ;;  %v5108_v5 = vld [vmem:[#allocation8 + $0x424] ss:$24 sps:$4 sm:$0xff]   ;;  %v5110_v6 = vld [vmem:[#allocation8 + $0x120] ss:$24 sps:$4 sm:$0xff]   ;;  %v5112_v8 = vld [vmem:[#allocation8 + $0xf4] ss:$24 sps:$4 sm:$0xff]  }
  0x4d   :  { %2201 = vmatpush1.bf16.msra.mxu1 %v5105_v3  ;;  %2159 = vmatprep.subr.bf16.mxu0 %v5106_v4  ;;  %v5111_v7 = vld [vmem:[#allocation8 + $0x420] ss:$24 sps:$4 sm:$0xff]   ;;  %v5114_v9 = vld [vmem:[#allocation8 + $0x3f4] ss:$24 sps:$4 sm:$0xff]   ;;  %v5116_v10 = vld [vmem:[#allocation8 + $0xf0] ss:$24 sps:$4 sm:$0xff]  }
  0x4e   :  { %2202 = vmatprep.subr.bf16.mxu1 %v5108_v5  ;;  %v5117_v11 = vld [vmem:[#allocation8 + $0x3f0] ss:$24 sps:$4 sm:$0xff]   ;;  %v5118_v12 = vld [vmem:[#allocation8 + $0xc4] ss:$24 sps:$4 sm:$0xff]   ;;  %v5122_v14 = vld [vmem:[#allocation8 + $0xc0] ss:$24 sps:$4 sm:$0xff]  }
  0x4f   :  { %v5120_v13 = vld [vmem:[#allocation8 + $0x3c4] ss:$24 sps:$4 sm:$0xff]   ;;  %v5123_v15 = vld [vmem:[#allocation8 + $0x3c0] ss:$24 sps:$4 sm:$0xff]   ;;  %v5124_v16 = vld [vmem:[#allocation8 + $0x94] ss:$24 sps:$4 sm:$0xff]  }
  0x50   :  { %2160 = vmatpush1.bf16.msra.mxu0 %v5110_v6  ;;  %v5126_v17 = vld [vmem:[#allocation8 + $0x394] ss:$24 sps:$4 sm:$0xff]   ;;  %v5128_v18 = vld [vmem:[#allocation8 + $0x90] ss:$24 sps:$4 sm:$0xff]   ;;  %v5130_v20 = vld [vmem:[#allocation8 + $0x64] ss:$24 sps:$4 sm:$0xff]  }
  0x51   :  { %2203 = vmatpush1.bf16.msra.mxu1 %v5111_v7  ;;  %2161 = vmatprep.subr.bf16.mxu0 %v5112_v8  ;;  %v5129_v19 = vld [vmem:[#allocation8 + $0x390] ss:$24 sps:$4 sm:$0xff]   ;;  %v5132_v21 = vld [vmem:[#allocation8 + $0x364] ss:$24 sps:$4 sm:$0xff]   ;;  %v5134_v22 = vld [vmem:[#allocation8 + $0x60] ss:$24 sps:$4 sm:$0xff]  }
  0x52   :  { %2204 = vmatprep.subr.bf16.mxu1 %v5114_v9  ;;  %v5135_v23 = vld [vmem:[#allocation8 + $0x360] ss:$24 sps:$4 sm:$0xff]   ;;  %v5136_v24 = vld [vmem:[#allocation8 + $0x34] ss:$24 sps:$4 sm:$0xff]   ;;  %v5140_v26 = vld [vmem:[#allocation8 + $0x30] ss:$24 sps:$4 sm:$0xff]  }
  0x53   :  { %v5138_v25 = vld [vmem:[#allocation8 + $0x334] ss:$24 sps:$4 sm:$0xff]   ;;  %v5141_v27 = vld [vmem:[#allocation8 + $0x330] ss:$24 sps:$4 sm:$0xff]   ;;  %v5142_v28 = vld [vmem:[#allocation8 + $0x4] ss:$24 sps:$4 sm:$0xff]  }
  0x54   :  { %2162 = vmatpush1.bf16.msra.mxu0 %v5116_v10  ;;  %v5144_v29 = vld [vmem:[#allocation8 + $0x304] ss:$24 sps:$4 sm:$0xff]   ;;  %v5146_v30 = vld [vmem:[#allocation8] ss:$24 sps:$4 sm:$0xff]   ;;  %v5148_v32 = vld [vmem:[#allocation8 + $0x2d4] ss:$24 sps:$4 sm:$0xff]  }
  0x55   :  { %2205 = vmatpush1.bf16.msra.mxu1 %v5117_v11  ;;  %2163 = vmatprep.subr.bf16.mxu0 %v5118_v12  ;;  %v5147_v31 = vld [vmem:[#allocation8 + $0x300] ss:$24 sps:$4 sm:$0xff]   ;;  %v5150_v33 = vld [vmem:[#allocation8 + $0x5d4] ss:$24 sps:$4 sm:$0xff]   ;;  %v5152_v34 = vld [vmem:[#allocation8 + $0x2d0] ss:$24 sps:$4 sm:$0xff]  }
  0x56   :  { %2206 = vmatprep.subr.bf16.mxu1 %v5120_v13  ;;  %v5153_v35 = vld [vmem:[#allocation8 + $0x5d0] ss:$24 sps:$4 sm:$0xff]   ;;  %v5154_v36 = vld [vmem:[#allocation8 + $0x2a4] ss:$24 sps:$4 sm:$0xff]   ;;  %v5158_v38 = vld [vmem:[#allocation8 + $0x2a0] ss:$24 sps:$4 sm:$0xff]  }
  0x57   :  { %v5156_v37 = vld [vmem:[#allocation8 + $0x5a4] ss:$24 sps:$4 sm:$0xff]   ;;  %v5159_v39 = vld [vmem:[#allocation8 + $0x5a0] ss:$24 sps:$4 sm:$0xff]   ;;  %v5160_v40 = vld [vmem:[#allocation8 + $0x274] ss:$24 sps:$4 sm:$0xff]  }
  0x58   :  { %2164 = vmatpush1.bf16.msra.mxu0 %v5122_v14  ;;  %v5162_v41 = vld [vmem:[#allocation8 + $0x574] ss:$24 sps:$4 sm:$0xff]   ;;  %v5164_v42 = vld [vmem:[#allocation8 + $0x270] ss:$24 sps:$4 sm:$0xff]   ;;  %v5166_v44 = vld [vmem:[#allocation8 + $0x244] ss:$24 sps:$4 sm:$0xff]  }
  0x59   :  { %2207 = vmatpush1.bf16.msra.mxu1 %v5123_v15  ;;  %2165 = vmatprep.subr.bf16.mxu0 %v5124_v16  ;;  %v5165_v43 = vld [vmem:[#allocation8 + $0x570] ss:$24 sps:$4 sm:$0xff]   ;;  %v5168_v45 = vld [vmem:[#allocation8 + $0x544] ss:$24 sps:$4 sm:$0xff]   ;;  %v5170_v50 = vld [vmem:[#allocation8 + $0x240] ss:$24 sps:$4 sm:$0xff]  }
  0x5a   :  { %2208 = vmatprep.subr.bf16.mxu1 %v5126_v17  ;;  %v124_v46 = vld [vmem:[#allocation5 + $0x8] sm:$0xff]  ;;  %v130_v47 = vld [vmem:[#allocation5 + $0x38] sm:$0xff]  ;;  %v123_v6 = vld [vmem:[#allocation5] sm:$0xff]  ;;  %vm4501_vm0 = vcmask 7168  }
  0x5b   :  { %v126_v48 = vld [vmem:[#allocation5 + $0x18] sm:$0xff]  ;;  %v132_v49 = vld [vmem:[#allocation5 + $0x48] sm:$0xff]  ;;  %v6168_v53 = vpack.c.bf16 %v130_v47, %v124_v46  ;;  %v129_v7 = vld [vmem:[#allocation5 + $0x30] sm:$0xff] }
  0x5c   :  { %2166 = vmatpush1.bf16.msra.mxu0 %v5128_v18  ;;  %v5171_v51 = vld [vmem:[#allocation8 + $0x540] ss:$24 sps:$4 sm:$0xff]   ;;  %v5172_v52 = vld [vmem:[#allocation8 + $0x214] ss:$24 sps:$4 sm:$0xff]   ;;  %v6170_v54 = vpack.c.bf16 %v132_v49, %v126_v48  ;;  %v5176_v56 = vld [vmem:[#allocation8 + $0x210] ss:$24 sps:$4 sm:$0xff]   ;;  %v6174_v12 = vpack.c.bf16 %v129_v7, %v123_v6 }
  0x5d   :  { %2209 = vmatpush1.bf16.msra.mxu1 %v5129_v19  ;;  %2167 = vmatprep.subr.bf16.mxu0 %v5130_v20  ;;  %v5174_v55 = vld [vmem:[#allocation8 + $0x514] ss:$24 sps:$4 sm:$0xff]   ;;  %v5177_v57 = vld [vmem:[#allocation8 + $0x510] ss:$24 sps:$4 sm:$0xff]   ;;  %v5178_v58 = vld [vmem:[#allocation8 + $0x1e4] ss:$24 sps:$4 sm:$0xff]  }
  0x5e   :  { %2210 = vmatprep.subr.bf16.mxu1 %v5132_v21  ;;  %2189 = vmatprep.mubr.bf16.mxu0 %v6168_v53  ;;  %v5180_v59 = vld [vmem:[#allocation8 + $0x4e4] ss:$24 sps:$4 sm:$0xff]   ;;  %v5182_v60 = vld [vmem:[#allocation8 + $0x1e0] ss:$24 sps:$4 sm:$0xff]   ;;  %v5184_v62 = vld [vmem:[#allocation8 + $0x1b4] ss:$24 sps:$4 sm:$0xff]  }
  0x5f   :  { %2232 = vmatprep.mubr.bf16.mxu1 %v6170_v54  ;;  %v5183_v61 = vld [vmem:[#allocation8 + $0x4e0] ss:$24 sps:$4 sm:$0xff]   ;;  %v5186_v63 = vld [vmem:[#allocation8 + $0x4b4] ss:$24 sps:$4 sm:$0xff]   ;;  %v5188_v0 = vld [vmem:[#allocation8 + $0x1b0] ss:$24 sps:$4 sm:$0xff]  }
  0x60   :  { %2168 = vmatpush1.bf16.msra.mxu0 %v5134_v22  ;;  %v5189_v1 = vld [vmem:[#allocation8 + $0x4b0] ss:$24 sps:$4 sm:$0xff]   ;;  %v5190_v2 = vld [vmem:[#allocation8 + $0x184] ss:$24 sps:$4 sm:$0xff]   ;;  %v5194_v4 = vld [vmem:[#allocation8 + $0x180] ss:$24 sps:$4 sm:$0xff]  }
  0x61   :  { %2211 = vmatpush1.bf16.msra.mxu1 %v5135_v23  ;;  %2169 = vmatprep.subr.bf16.mxu0 %v5136_v24  ;;  %v5192_v3 = vld [vmem:[#allocation8 + $0x484] ss:$24 sps:$4 sm:$0xff]   ;;  %v5195_v5 = vld [vmem:[#allocation8 + $0x480] ss:$24 sps:$4 sm:$0xff]   ;;  %v125_v8 = vld [vmem:[#allocation5 + $0x10] sm:$0xff] }
  0x62   :  { %2212 = vmatprep.subr.bf16.mxu1 %v5138_v25  ;;  %v131_v9 = vld [vmem:[#allocation5 + $0x40] sm:$0xff]  ;;  %v5198_v10 = vld [vmem:[#allocation8 + $0x754] ss:$24 sps:$4 sm:$0xff]   ;;  %v5196_v14 = vld [vmem:[#allocation8 + $0x750] ss:$24 sps:$4 sm:$0xff]  }
  0x63   :  { %v5201_v11 = vld [vmem:[#allocation8 + $0x15c] ss:$24 sps:$4 sm:$0xff]   ;;  %v6176_v13 = vpack.c.bf16 %v131_v9, %v125_v8  ;;  %v5199_v15 = vld [vmem:[#allocation8 + $0x158] ss:$24 sps:$4 sm:$0xff]   ;;  %v5207_v17 = vld [vmem:[#allocation8 + $0x12c] ss:$24 sps:$4 sm:$0xff]  }
  0x64   :  { %2170 = vmatpush1.bf16.msra.mxu0 %v5140_v26  ;;  %v5204_v16 = vld [vmem:[#allocation8 + $0x724] ss:$24 sps:$4 sm:$0xff]   ;;  %v5202_v18 = vld [vmem:[#allocation8 + $0x720] ss:$24 sps:$4 sm:$0xff]   ;;  %v5210_v20 = vld [vmem:[#allocation8 + $0x6f4] ss:$24 sps:$4 sm:$0xff]  }
  0x65   :  { %2213 = vmatpush1.bf16.msra.mxu1 %v5141_v27  ;;  %2171 = vmatprep.subr.bf16.mxu0 %v5142_v28  ;;  %v5205_v19 = vld [vmem:[#allocation8 + $0x128] ss:$24 sps:$4 sm:$0xff]   ;;  %v5213_v21 = vld [vmem:[#allocation8 + $0xfc] ss:$24 sps:$4 sm:$0xff]   ;;  %v5211_v23 = vld [vmem:[#allocation8 + $0xf8] ss:$24 sps:$4 sm:$0xff]  }
  0x66   :  { %2214 = vmatprep.subr.bf16.mxu1 %v5144_v29  ;;  %v5208_v22 = vld [vmem:[#allocation8 + $0x6f0] ss:$24 sps:$4 sm:$0xff]   ;;  %v5216_v24 = vld [vmem:[#allocation8 + $0x6c4] ss:$24 sps:$4 sm:$0xff]   ;;  %v5214_v26 = vld [vmem:[#allocation8 + $0x6c0] ss:$24 sps:$4 sm:$0xff]  }
  0x67   :  { %v5219_v25 = vld [vmem:[#allocation8 + $0xcc] ss:$24 sps:$4 sm:$0xff]   ;;  %v5217_v27 = vld [vmem:[#allocation8 + $0xc8] ss:$24 sps:$4 sm:$0xff]   ;;  %v5225_v29 = vld [vmem:[#allocation8 + $0x9c] ss:$24 sps:$4 sm:$0xff]  }
  0x68   :  { %2172 = vmatpush1.bf16.msra.mxu0 %v5146_v30  ;;  %v5222_v28 = vld [vmem:[#allocation8 + $0x694] ss:$24 sps:$4 sm:$0xff]   ;;  %v5220_v30 = vld [vmem:[#allocation8 + $0x690] ss:$24 sps:$4 sm:$0xff]   ;;  %v5274_v7 = vld [vmem:[#allocation8 + $0x7e0] ss:$24 sps:$4 sm:$0xff]  }
  0x69   :  { %2215 = vmatpush1.bf16.msra.mxu1 %v5147_v31  ;;  %2173 = vmatprep.subr.bf16.mxu0 %v5148_v32  ;;  %v5223_v31 = vld [vmem:[#allocation8 + $0x98] ss:$24 sps:$4 sm:$0xff]   ;;  %v5228_v32 = vld [vmem:[#allocation8 + $0x664] ss:$24 sps:$4 sm:$0xff]   ;;  %v5241_v46 = vld [vmem:[#allocation8 + $0x8] ss:$24 sps:$4 sm:$0xff]  }
  0x6a   :  { %2216 = vmatprep.subr.bf16.mxu1 %v5150_v33  ;;  %v5231_v33 = vld [vmem:[#allocation8 + $0x6c] ss:$24 sps:$4 sm:$0xff]   ;;  %v5249_v48 = vld [vmem:[#allocation8 + $0x2dc] ss:$24 sps:$4 sm:$0xff]   ;;  %v5244_v49 = vld [vmem:[#allocation8 + $0x8d0] ss:$24 sps:$4 sm:$0xff]  }
  0x6b   :  { %v5246_v47 = vld [vmem:[#allocation8 + $0x8d4] ss:$24 sps:$4 sm:$0xff]   ;;  %v5277_v8 = vld [vmem:[#allocation8 + $0x1e8] ss:$24 sps:$4 sm:$0xff]  }
  0x6c   :  { %2174 = vmatpush2.bf16.msra.mxu0 %v5152_v34  ;;  %v5226_v34 = vld [vmem:[#allocation8 + $0x660] ss:$24 sps:$4 sm:$0xff]   ;;  %v5279_v6 = vld [vmem:[#allocation8 + $0x1ec] ss:$24 sps:$4 sm:$0xff]  }
  0x6d   :  { %2217 = vmatpush2.bf16.msra.mxu1 %v5153_v35  ;;  %2175 = vmatprep.subr.bf16.mxu0 %v5154_v36  ;;  %v5229_v35 = vld [vmem:[#allocation8 + $0x68] ss:$24 sps:$4 sm:$0xff]   ;;  %v5234_v36 = vld [vmem:[#allocation8 + $0x634] ss:$24 sps:$4 sm:$0xff]  }
  0x6e   :  { %2218 = vmatprep.subr.bf16.mxu1 %v5156_v37  ;;  %v5237_v37 = vld [vmem:[#allocation8 + $0x3c] ss:$24 sps:$4 sm:$0xff]  }
  0x6f   :  { %v5282_v9 = vld [vmem:[#allocation8 + $0x7b4] ss:$24 sps:$4 sm:$0xff]  }
  0x70   :  { %2176 = vmatpush2.bf16.msra.mxu0 %v5158_v38  ;;  %v5232_v38 = vld [vmem:[#allocation8 + $0x630] ss:$24 sps:$4 sm:$0xff]  }
  0x71   :  { %2219 = vmatpush2.bf16.msra.mxu1 %v5159_v39  ;;  %2177 = vmatprep.subr.bf16.mxu0 %v5160_v40  ;;  %v5235_v39 = vld [vmem:[#allocation8 + $0x38] ss:$24 sps:$4 sm:$0xff]   ;;  %v5240_v40 = vld [vmem:[#allocation8 + $0x604] ss:$24 sps:$4 sm:$0xff]  }
  0x72   :  { %2220 = vmatprep.subr.bf16.mxu1 %v5162_v41  ;;  %v128_v41 = vld [vmem:[#allocation5 + $0x28] sm:$0xff] }
  0x74   :  { %2178 = vmatpush2.bf16.msra.mxu0 %v5164_v42  ;;  %v134_v42 = vld [vmem:[#allocation5 + $0x58] sm:$0xff] }
  0x75   :  { %2221 = vmatpush2.bf16.msra.mxu1 %v5165_v43  ;;  %2179 = vmatprep.subr.bf16.mxu0 %v5166_v44  ;;  %v5243_v43 = vld [vmem:[#allocation8 + $0xc] ss:$24 sps:$4 sm:$0xff]   ;;  %v6181_v44 = vpack.c.bf16 %v134_v42, %v128_v41  ;;  %v5319_v41 = vld [vmem:[#allocation8 + $0x698] ss:$24 sps:$4 sm:$0xff]  }
  0x76   :  { %2222 = vmatprep.subr.bf16.mxu1 %v5168_v45  ;;  %v5238_v45 = vld [vmem:[#allocation8 + $0x600] ss:$24 sps:$4 sm:$0xff]   ;;  %v5324_v42 = vld [vmem:[#allocation8 + $0x36c] ss:$24 sps:$4 sm:$0xff]  }
  0x78   :  { %2180 = vmatpush2.bf16.msra.mxu0 %v5170_v50  ;;  %v5247_v50 = vld [vmem:[#allocation8 + $0x2d8] ss:$24 sps:$4 sm:$0xff]  }
  0x79   :  { %2223 = vmatpush2.bf16.msra.mxu1 %v5171_v51  ;;  %2181 = vmatprep.subr.bf16.mxu0 %v5172_v52  ;;  %v5252_v51 = vld [vmem:[#allocation8 + $0x8a4] ss:$24 sps:$4 sm:$0xff]  }
  0x7a   :  { %2224 = vmatprep.subr.bf16.mxu1 %v5174_v55  ;;  %v5255_v52 = vld [vmem:[#allocation8 + $0x2ac] ss:$24 sps:$4 sm:$0xff]   ;;  %v5250_v55 = vld [vmem:[#allocation8 + $0x8a0] ss:$24 sps:$4 sm:$0xff]  }
  0x7c   :  { %2182 = vmatpush2.bf16.msra.mxu0 %v5176_v56  ;;  %v5253_v56 = vld [vmem:[#allocation8 + $0x2a8] ss:$24 sps:$4 sm:$0xff]  }
  0x7d   :  { %2225 = vmatpush2.bf16.msra.mxu1 %v5177_v57  ;;  %2183 = vmatprep.subr.bf16.mxu0 %v5178_v58  ;;  %v5258_v57 = vld [vmem:[#allocation8 + $0x874] ss:$24 sps:$4 sm:$0xff]  }
  0x7e   :  { %2226 = vmatprep.subr.bf16.mxu1 %v5180_v59  ;;  %v5261_v58 = vld [vmem:[#allocation8 + $0x27c] ss:$24 sps:$4 sm:$0xff]   ;;  %v5256_v59 = vld [vmem:[#allocation8 + $0x870] ss:$24 sps:$4 sm:$0xff]  }
  0x80   :  { %2184 = vmatpush2.bf16.msra.mxu0 %v5182_v60  ;;  %v5259_v60 = vld [vmem:[#allocation8 + $0x278] ss:$24 sps:$4 sm:$0xff]  }
  0x81   :  { %2227 = vmatpush2.bf16.msra.mxu1 %v5183_v61  ;;  %2185 = vmatprep.subr.bf16.mxu0 %v5184_v62  ;;  %v5264_v61 = vld [vmem:[#allocation8 + $0x844] ss:$24 sps:$4 sm:$0xff]  }
  0x82   :  { %2228 = vmatprep.subr.bf16.mxu1 %v5186_v63  ;;  %v5267_v62 = vld [vmem:[#allocation8 + $0x24c] ss:$24 sps:$4 sm:$0xff]   ;;  %v5262_v63 = vld [vmem:[#allocation8 + $0x840] ss:$24 sps:$4 sm:$0xff]  }
  0x84   :  { %2186 = vmatpush2.bf16.msra.mxu0 %v5188_v0  ;;  %v5265_v0 = vld [vmem:[#allocation8 + $0x248] ss:$24 sps:$4 sm:$0xff]  }
  0x85   :  { %2229 = vmatpush2.bf16.msra.mxu1 %v5189_v1  ;;  %2187 = vmatprep.subr.bf16.mxu0 %v5190_v2  ;;  %v5270_v1 = vld [vmem:[#allocation8 + $0x814] ss:$24 sps:$4 sm:$0xff]  }
  0x86   :  { %2230 = vmatprep.subr.bf16.mxu1 %v5192_v3  ;;  %v5273_v2 = vld [vmem:[#allocation8 + $0x21c] ss:$24 sps:$4 sm:$0xff]   ;;  %v5268_v3 = vld [vmem:[#allocation8 + $0x810] ss:$24 sps:$4 sm:$0xff]  }
  0x88   :  { %2188 = vmatpush2.bf16.msra.mxu0 %v5194_v4  ;;  %v5271_v4 = vld [vmem:[#allocation8 + $0x218] ss:$24 sps:$4 sm:$0xff]  }
  0x89   :  { %2231 = vmatpush2.bf16.msra.mxu1 %v5195_v5  ;;  %2243 = vmatprep.subr.bf16.mxu0 %v5198_v10  ;;  %v5276_v5 = vld [vmem:[#allocation8 + $0x7e4] ss:$24 sps:$4 sm:$0xff]  }
  0x8a   :  { %2286 = vmatprep.subr.bf16.mxu1 %v5201_v11  ;;  %v5285_v10 = vld [vmem:[#allocation8 + $0x1bc] ss:$24 sps:$4 sm:$0xff]   ;;  %v5280_v11 = vld [vmem:[#allocation8 + $0x7b0] ss:$24 sps:$4 sm:$0xff]  }
  0x8b   :  { %2190 = vmatmul.mubr.bf16.vlgmr.msra.gmra.mxu0 %v6174_v12 }
  0x8c   :  { %2233 = vmatmul.mubr.bf16.vlgmr.msra.gmra.mxu1 %v6176_v13  ;;  %2244 = vmatpush1.bf16.msra.mxu0 %v5196_v14  ;;  %v5283_v14 = vld [vmem:[#allocation8 + $0x1b8] ss:$24 sps:$4 sm:$0xff]  }
  0x8d   :  { %2287 = vmatpush1.bf16.msra.mxu1 %v5199_v15  ;;  %2245 = vmatprep.subr.bf16.mxu0 %v5204_v16  ;;  %v5288_v15 = vld [vmem:[#allocation8 + $0x784] ss:$24 sps:$4 sm:$0xff]  }
  0x8e   :  { %2288 = vmatprep.subr.bf16.mxu1 %v5207_v17  ;;  %2318 = vmatprep.mubr.bf16.mxu1 %v6168_v53  ;;  %v5291_v16 = vld [vmem:[#allocation8 + $0x18c] ss:$24 sps:$4 sm:$0xff]   ;;  %v5286_v17 = vld [vmem:[#allocation8 + $0x780] ss:$24 sps:$4 sm:$0xff]  }
  0x8f   :  { %2275 = vmatprep.mubr.bf16.mxu0 %v6181_v44 }
  0x90   :  { %2246 = vmatpush1.bf16.msra.mxu0 %v5202_v18  ;;  %v5289_v18 = vld [vmem:[#allocation8 + $0x188] ss:$24 sps:$4 sm:$0xff]  }
  0x91   :  { %2289 = vmatpush1.bf16.msra.mxu1 %v5205_v19  ;;  %2247 = vmatprep.subr.bf16.mxu0 %v5210_v20  ;;  %v127_v19 = vld [vmem:[#allocation5 + $0x20] sm:$0xff]  ;;  %v133_v20 = vld [vmem:[#allocation5 + $0x50] sm:$0xff] }
  0x92   :  { %2290 = vmatprep.subr.bf16.mxu1 %v5213_v21  ;;  %v5294_v21 = vld [vmem:[#allocation8 + $0x45c] ss:$24 sps:$4 sm:$0xff]  }
  0x94   :  { %2248 = vmatpush1.bf16.msra.mxu0 %v5208_v22  ;;  %v5297_v22 = vld [vmem:[#allocation8 + $0x75c] ss:$24 sps:$4 sm:$0xff]  }
  0x95   :  { %2291 = vmatpush1.bf16.msra.mxu1 %v5211_v23  ;;  %2249 = vmatprep.subr.bf16.mxu0 %v5216_v24  ;;  %v6184_v23 = vpack.c.bf16 %v133_v20, %v127_v19  ;;  %v5292_v24 = vld [vmem:[#allocation8 + $0x458] ss:$24 sps:$4 sm:$0xff]   ;;  %v5378_v19 = vld [vmem:[#allocation8 + $0x4bc] ss:$24 sps:$4 sm:$0xff]  }
  0x96   :  { %2292 = vmatprep.subr.bf16.mxu1 %v5219_v25  ;;  %v5295_v25 = vld [vmem:[#allocation8 + $0x758] ss:$24 sps:$4 sm:$0xff]   ;;  %v5381_v20 = vld [vmem:[#allocation8 + $0x7bc] ss:$24 sps:$4 sm:$0xff]  }
  0x98   :  { %2250 = vmatpush1.bf16.msra.mxu0 %v5214_v26  ;;  %v5300_v26 = vld [vmem:[#allocation8 + $0x42c] ss:$24 sps:$4 sm:$0xff]  }
  0x99   :  { %2293 = vmatpush1.bf16.msra.mxu1 %v5217_v27  ;;  %2251 = vmatprep.subr.bf16.mxu0 %v5222_v28  ;;  %v5303_v27 = vld [vmem:[#allocation8 + $0x72c] ss:$24 sps:$4 sm:$0xff]   ;;  %v5298_v28 = vld [vmem:[#allocation8 + $0x428] ss:$24 sps:$4 sm:$0xff]  }
  0x9a   :  { %2294 = vmatprep.subr.bf16.mxu1 %v5225_v29  ;;  %v5301_v29 = vld [vmem:[#allocation8 + $0x728] ss:$24 sps:$4 sm:$0xff]  }
  0x9c   :  { %2252 = vmatpush1.bf16.msra.mxu0 %v5220_v30  ;;  %v5306_v30 = vld [vmem:[#allocation8 + $0x3fc] ss:$24 sps:$4 sm:$0xff]  }
  0x9d   :  { %2295 = vmatpush1.bf16.msra.mxu1 %v5223_v31  ;;  %2253 = vmatprep.subr.bf16.mxu0 %v5228_v32  ;;  %v5309_v31 = vld [vmem:[#allocation8 + $0x6fc] ss:$24 sps:$4 sm:$0xff]   ;;  %v5304_v32 = vld [vmem:[#allocation8 + $0x3f8] ss:$24 sps:$4 sm:$0xff]  }
  0x9e   :  { %2296 = vmatprep.subr.bf16.mxu1 %v5231_v33  ;;  %v5307_v33 = vld [vmem:[#allocation8 + $0x6f8] ss:$24 sps:$4 sm:$0xff]  }
  0xa0   :  { %2254 = vmatpush1.bf16.msra.mxu0 %v5226_v34  ;;  %v5312_v34 = vld [vmem:[#allocation8 + $0x3cc] ss:$24 sps:$4 sm:$0xff]  }
  0xa1   :  { %2297 = vmatpush1.bf16.msra.mxu1 %v5229_v35  ;;  %2255 = vmatprep.subr.bf16.mxu0 %v5234_v36  ;;  %v5315_v35 = vld [vmem:[#allocation8 + $0x6cc] ss:$24 sps:$4 sm:$0xff]   ;;  %v5310_v36 = vld [vmem:[#allocation8 + $0x3c8] ss:$24 sps:$4 sm:$0xff]  }
  0xa2   :  { %2298 = vmatprep.subr.bf16.mxu1 %v5237_v37  ;;  %v5313_v37 = vld [vmem:[#allocation8 + $0x6c8] ss:$24 sps:$4 sm:$0xff]  }
  0xa4   :  { %2256 = vmatpush1.bf16.msra.mxu0 %v5232_v38  ;;  %v5318_v38 = vld [vmem:[#allocation8 + $0x39c] ss:$24 sps:$4 sm:$0xff]  }
  0xa5   :  { %2299 = vmatpush1.bf16.msra.mxu1 %v5235_v39  ;;  %2257 = vmatprep.subr.bf16.mxu0 %v5240_v40  ;;  %v5321_v39 = vld [vmem:[#allocation8 + $0x69c] ss:$24 sps:$4 sm:$0xff]   ;;  %v5316_v40 = vld [vmem:[#allocation8 + $0x398] ss:$24 sps:$4 sm:$0xff]  }
  0xa6   :  { %2300 = vmatprep.subr.bf16.mxu1 %v5243_v43  ;;  %v5327_v43 = vld [vmem:[#allocation8 + $0x66c] ss:$24 sps:$4 sm:$0xff]  }
  0xa8   :  { %2258 = vmatpush1.bf16.msra.mxu0 %v5238_v45  ;;  %v5322_v45 = vld [vmem:[#allocation8 + $0x368] ss:$24 sps:$4 sm:$0xff]  }
  0xa9   :  { %2301 = vmatpush1.bf16.msra.mxu1 %v5241_v46  ;;  %2259 = vmatprep.subr.bf16.mxu0 %v5246_v47  ;;  %v5325_v46 = vld [vmem:[#allocation8 + $0x668] ss:$24 sps:$4 sm:$0xff]   ;;  %v5330_v47 = vld [vmem:[#allocation8 + $0x33c] ss:$24 sps:$4 sm:$0xff]  }
  0xaa   :  { %2302 = vmatprep.subr.bf16.mxu1 %v5249_v48  ;;  %v5333_v48 = vld [vmem:[#allocation8 + $0x63c] ss:$24 sps:$4 sm:$0xff]  }
  0xac   :  { %2260 = vmatpush2.bf16.msra.mxu0 %v5244_v49  ;;  %v5328_v49 = vld [vmem:[#allocation8 + $0x338] ss:$24 sps:$4 sm:$0xff]  }
  0xad   :  { %2303 = vmatpush2.bf16.msra.mxu1 %v5247_v50  ;;  %2261 = vmatprep.subr.bf16.mxu0 %v5252_v51  ;;  %v5331_v50 = vld [vmem:[#allocation8 + $0x638] ss:$24 sps:$4 sm:$0xff]   ;;  %v5336_v51 = vld [vmem:[#allocation8 + $0x30c] ss:$24 sps:$4 sm:$0xff]  }
  0xae   :  { %2304 = vmatprep.subr.bf16.mxu1 %v5255_v52  ;;  %v5339_v52 = vld [vmem:[#allocation8 + $0x60c] ss:$24 sps:$4 sm:$0xff]  }
  0xb0   :  { %2262 = vmatpush2.bf16.msra.mxu0 %v5250_v55  ;;  %v5334_v55 = vld [vmem:[#allocation8 + $0x308] ss:$24 sps:$4 sm:$0xff]  }
  0xb1   :  { %2305 = vmatpush2.bf16.msra.mxu1 %v5253_v56  ;;  %2263 = vmatprep.subr.bf16.mxu0 %v5258_v57  ;;  %v5337_v56 = vld [vmem:[#allocation8 + $0x608] ss:$24 sps:$4 sm:$0xff]   ;;  %v5342_v57 = vld [vmem:[#allocation8 + $0x5dc] ss:$24 sps:$4 sm:$0xff]  }
  0xb2   :  { %2306 = vmatprep.subr.bf16.mxu1 %v5261_v58  ;;  %v5345_v58 = vld [vmem:[#allocation8 + $0x8dc] ss:$24 sps:$4 sm:$0xff]  }
  0xb4   :  { %2264 = vmatpush2.bf16.msra.mxu0 %v5256_v59  ;;  %v5340_v59 = vld [vmem:[#allocation8 + $0x5d8] ss:$24 sps:$4 sm:$0xff]  }
  0xb5   :  { %2307 = vmatpush2.bf16.msra.mxu1 %v5259_v60  ;;  %2265 = vmatprep.subr.bf16.mxu0 %v5264_v61  ;;  %v5343_v60 = vld [vmem:[#allocation8 + $0x8d8] ss:$24 sps:$4 sm:$0xff]   ;;  %v5348_v61 = vld [vmem:[#allocation8 + $0x5ac] ss:$24 sps:$4 sm:$0xff]  }
  0xb6   :  { %2308 = vmatprep.subr.bf16.mxu1 %v5267_v62  ;;  %v5351_v62 = vld [vmem:[#allocation8 + $0x8ac] ss:$24 sps:$4 sm:$0xff]  }
  0xb8   :  { %2266 = vmatpush2.bf16.msra.mxu0 %v5262_v63  ;;  %v5346_v63 = vld [vmem:[#allocation8 + $0x5a8] ss:$24 sps:$4 sm:$0xff]  }
  0xb9   :  { %2309 = vmatpush2.bf16.msra.mxu1 %v5265_v0  ;;  %2267 = vmatprep.subr.bf16.mxu0 %v5270_v1  ;;  %v5349_v0 = vld [vmem:[#allocation8 + $0x8a8] ss:$24 sps:$4 sm:$0xff]   ;;  %v5354_v1 = vld [vmem:[#allocation8 + $0x57c] ss:$24 sps:$4 sm:$0xff]  }
  0xba   :  { %2310 = vmatprep.subr.bf16.mxu1 %v5273_v2  ;;  %v5357_v2 = vld [vmem:[#allocation8 + $0x87c] ss:$24 sps:$4 sm:$0xff]  }
  0xbc   :  { %2268 = vmatpush2.bf16.msra.mxu0 %v5268_v3  ;;  %v5352_v3 = vld [vmem:[#allocation8 + $0x578] ss:$24 sps:$4 sm:$0xff]  }
  0xbd   :  { %2311 = vmatpush2.bf16.msra.mxu1 %v5271_v4  ;;  %2269 = vmatprep.subr.bf16.mxu0 %v5276_v5  ;;  %v5355_v4 = vld [vmem:[#allocation8 + $0x878] ss:$24 sps:$4 sm:$0xff]   ;;  %v5360_v5 = vld [vmem:[#allocation8 + $0x54c] ss:$24 sps:$4 sm:$0xff]  }
  0xbe   :  { %2312 = vmatprep.subr.bf16.mxu1 %v5279_v6  ;;  %v5363_v6 = vld [vmem:[#allocation8 + $0x84c] ss:$24 sps:$4 sm:$0xff]  }
  0xc0   :  { %2270 = vmatpush2.bf16.msra.mxu0 %v5274_v7  ;;  %v5358_v7 = vld [vmem:[#allocation8 + $0x548] ss:$24 sps:$4 sm:$0xff]  }
  0xc1   :  { %2313 = vmatpush2.bf16.msra.mxu1 %v5277_v8  ;;  %2271 = vmatprep.subr.bf16.mxu0 %v5282_v9  ;;  %v5361_v8 = vld [vmem:[#allocation8 + $0x848] ss:$24 sps:$4 sm:$0xff]   ;;  %v5366_v9 = vld [vmem:[#allocation8 + $0x51c] ss:$24 sps:$4 sm:$0xff]  }
  0xc2   :  { %2314 = vmatprep.subr.bf16.mxu1 %v5285_v10  ;;  %v5369_v10 = vld [vmem:[#allocation8 + $0x81c] ss:$24 sps:$4 sm:$0xff]  }
  0xc4   :  { %2272 = vmatpush2.bf16.msra.mxu0 %v5280_v11  ;;  %v5364_v11 = vld [vmem:[#allocation8 + $0x518] ss:$24 sps:$4 sm:$0xff]  }
  0xc5   :  { %2315 = vmatpush2.bf16.msra.mxu1 %v5283_v14  ;;  %2273 = vmatprep.subr.bf16.mxu0 %v5288_v15  ;;  %v5367_v14 = vld [vmem:[#allocation8 + $0x818] ss:$24 sps:$4 sm:$0xff]   ;;  %v5372_v15 = vld [vmem:[#allocation8 + $0x4ec] ss:$24 sps:$4 sm:$0xff]  }
  0xc6   :  { %2316 = vmatprep.subr.bf16.mxu1 %v5291_v16  ;;  %v5375_v16 = vld [vmem:[#allocation8 + $0x7ec] ss:$24 sps:$4 sm:$0xff]  }
  0xc8   :  { %2274 = vmatpush2.bf16.msra.mxu0 %v5286_v17  ;;  %v5370_v17 = vld [vmem:[#allocation8 + $0x4e8] ss:$24 sps:$4 sm:$0xff]  }
  0xc9   :  { %2317 = vmatpush2.bf16.msra.mxu1 %v5289_v18  ;;  %2329 = vmatprep.subr.bf16.mxu0 %v5294_v21  ;;  %v5373_v18 = vld [vmem:[#allocation8 + $0x7e8] ss:$24 sps:$4 sm:$0xff]   ;;  %v5376_v21 = vld [vmem:[#allocation8 + $0x4b8] ss:$24 sps:$4 sm:$0xff]  }
  0xca   :  { %2372 = vmatprep.subr.bf16.mxu1 %v5297_v22  ;;  %v5379_v22 = vld [vmem:[#allocation8 + $0x7b8] ss:$24 sps:$4 sm:$0xff]  }
  0xcb   :  { %2276 = vmatmul.mubr.bf16.vlgmr.msra.gmra.mxu0 %v6184_v23 }
  0xcc   :  { %2319 = vmatmul.mubr.bf16.vlgmr.msra.gmra.mxu1 %v6174_v12  ;;  %2330 = vmatpush1.bf16.msra.mxu0 %v5292_v24  ;;  %v5384_v24 = vld [vmem:[#allocation8 + $0x48c] ss:$24 sps:$4 sm:$0xff]  }
  0xcd   :  { %2373 = vmatpush1.bf16.msra.mxu1 %v5295_v25  ;;  %2331 = vmatprep.subr.bf16.mxu0 %v5300_v26  ;;  %v5387_v25 = vld [vmem:[#allocation8 + $0x78c] ss:$24 sps:$4 sm:$0xff]   ;;  %v5382_v26 = vld [vmem:[#allocation8 + $0x488] ss:$24 sps:$4 sm:$0xff]  }
  0xce   :  { %2374 = vmatprep.subr.bf16.mxu1 %v5303_v27  ;;  %2361 = vmatprep.mubr.bf16.mxu0 %v6170_v54  ;;  %v5385_v27 = vld [vmem:[#allocation8 + $0x788] ss:$24 sps:$4 sm:$0xff]  }
  0xcf   :  { %2404 = vmatprep.mubr.bf16.mxu1 %v6181_v44 }
  0xd0   :  { %2332 = vmatpush1.bf16.msra.mxu0 %v5298_v28  ;;  %v5390_v28 = vld [vmem:[#allocation8 + $0x164] ss:$24 sps:$4 sm:$0xff]  }
  0xd1   :  { %2375 = vmatpush1.bf16.msra.mxu1 %v5301_v29  ;;  %2333 = vmatprep.subr.bf16.mxu0 %v5306_v30  ;;  %v5393_v29 = vld [vmem:[#allocation8 + $0x464] ss:$24 sps:$4 sm:$0xff]   ;;  %v5388_v30 = vld [vmem:[#allocation8 + $0x160] ss:$24 sps:$4 sm:$0xff]  }
  0xd2   :  { %2376 = vmatprep.subr.bf16.mxu1 %v5309_v31  ;;  %v5391_v31 = vld [vmem:[#allocation8 + $0x460] ss:$24 sps:$4 sm:$0xff]  }
  0xd4   :  { %2334 = vmatpush1.bf16.msra.mxu0 %v5304_v32  ;;  %v5396_v32 = vld [vmem:[#allocation8 + $0x134] ss:$24 sps:$4 sm:$0xff]  }
  0xd5   :  { %2377 = vmatpush1.bf16.msra.mxu1 %v5307_v33  ;;  %2335 = vmatprep.subr.bf16.mxu0 %v5312_v34  ;;  %v5399_v33 = vld [vmem:[#allocation8 + $0x434] ss:$24 sps:$4 sm:$0xff]   ;;  %v5394_v34 = vld [vmem:[#allocation8 + $0x130] ss:$24 sps:$4 sm:$0xff]  }
  0xd6   :  { %2378 = vmatprep.subr.bf16.mxu1 %v5315_v35  ;;  %v5397_v35 = vld [vmem:[#allocation8 + $0x430] ss:$24 sps:$4 sm:$0xff]  }
  0xd8   :  { %2336 = vmatpush1.bf16.msra.mxu0 %v5310_v36  ;;  %v5402_v36 = vld [vmem:[#allocation8 + $0x104] ss:$24 sps:$4 sm:$0xff]  }
  0xd9   :  { %2379 = vmatpush1.bf16.msra.mxu1 %v5313_v37  ;;  %2337 = vmatprep.subr.bf16.mxu0 %v5318_v38  ;;  %v5405_v37 = vld [vmem:[#allocation8 + $0x404] ss:$24 sps:$4 sm:$0xff]   ;;  %v5400_v38 = vld [vmem:[#allocation8 + $0x100] ss:$24 sps:$4 sm:$0xff]  }
  0xda   :  { %2380 = vmatprep.subr.bf16.mxu1 %v5321_v39  ;;  %v5403_v39 = vld [vmem:[#allocation8 + $0x400] ss:$24 sps:$4 sm:$0xff]  }
  0xdc   :  { %2338 = vmatpush1.bf16.msra.mxu0 %v5316_v40  ;;  %v5408_v40 = vld [vmem:[#allocation8 + $0xd4] ss:$24 sps:$4 sm:$0xff]  }
  0xdd   :  { %2381 = vmatpush1.bf16.msra.mxu1 %v5319_v41  ;;  %2339 = vmatprep.subr.bf16.mxu0 %v5324_v42  ;;  %v5411_v41 = vld [vmem:[#allocation8 + $0x3d4] ss:$24 sps:$4 sm:$0xff]   ;;  %v5406_v42 = vld [vmem:[#allocation8 + $0xd0] ss:$24 sps:$4 sm:$0xff]  }
  0xde   :  { %2382 = vmatprep.subr.bf16.mxu1 %v5327_v43  ;;  %v5409_v43 = vld [vmem:[#allocation8 + $0x3d0] ss:$24 sps:$4 sm:$0xff]  }
  0xe0   :  { %2340 = vmatpush1.bf16.msra.mxu0 %v5322_v45  ;;  %v5414_v45 = vld [vmem:[#allocation8 + $0xa4] ss:$24 sps:$4 sm:$0xff]  }
  0xe1   :  { %2383 = vmatpush1.bf16.msra.mxu1 %v5325_v46  ;;  %2341 = vmatprep.subr.bf16.mxu0 %v5330_v47  ;;  %v5417_v46 = vld [vmem:[#allocation8 + $0x3a4] ss:$24 sps:$4 sm:$0xff]   ;;  %v5412_v47 = vld [vmem:[#allocation8 + $0xa0] ss:$24 sps:$4 sm:$0xff]  }
  0xe2   :  { %2384 = vmatprep.subr.bf16.mxu1 %v5333_v48  ;;  %v5423_v48 = vld [vmem:[#allocation8 + $0x374] ss:$24 sps:$4 sm:$0xff]  }
  0xe4   :  { %2342 = vmatpush1.bf16.msra.mxu0 %v5328_v49  ;;  %v5418_v49 = vld [vmem:[#allocation8 + $0x70] ss:$24 sps:$4 sm:$0xff]  }
  0xe5   :  { %2385 = vmatpush1.bf16.msra.mxu1 %v5331_v50  ;;  %2343 = vmatprep.subr.bf16.mxu0 %v5336_v51  ;;  %v5421_v50 = vld [vmem:[#allocation8 + $0x370] ss:$24 sps:$4 sm:$0xff]   ;;  %v5426_v51 = vld [vmem:[#allocation8 + $0x44] ss:$24 sps:$4 sm:$0xff]  }
  0xe6   :  { %2386 = vmatprep.subr.bf16.mxu1 %v5339_v52  ;;  %v5429_v52 = vld [vmem:[#allocation8 + $0x344] ss:$24 sps:$4 sm:$0xff]  }
  0xe8   :  { %2344 = vmatpush1.bf16.msra.mxu0 %v5334_v55  ;;  %v5424_v55 = vld [vmem:[#allocation8 + $0x40] ss:$24 sps:$4 sm:$0xff]  }
  0xe9   :  { %2387 = vmatpush1.bf16.msra.mxu1 %v5337_v56  ;;  %2345 = vmatprep.subr.bf16.mxu0 %v5342_v57  ;;  %v5427_v56 = vld [vmem:[#allocation8 + $0x340] ss:$24 sps:$4 sm:$0xff]   ;;  %v5432_v57 = vld [vmem:[#allocation8 + $0x14] ss:$24 sps:$4 sm:$0xff]  }
  0xea   :  { %2388 = vmatprep.subr.bf16.mxu1 %v5345_v58  ;;  %v5435_v58 = vld [vmem:[#allocation8 + $0x314] ss:$24 sps:$4 sm:$0xff]  }
  0xec   :  { %2346 = vmatpush2.bf16.msra.mxu0 %v5340_v59  ;;  %v5430_v59 = vld [vmem:[#allocation8 + $0x10] ss:$24 sps:$4 sm:$0xff]  }
  0xed   :  { %2389 = vmatpush2.bf16.msra.mxu1 %v5343_v60  ;;  %2347 = vmatprep.subr.bf16.mxu0 %v5348_v61  ;;  %v5433_v60 = vld [vmem:[#allocation8 + $0x310] ss:$24 sps:$4 sm:$0xff]   ;;  %v5438_v61 = vld [vmem:[#allocation8 + $0x2e4] ss:$24 sps:$4 sm:$0xff]  }
  0xee   :  { %2390 = vmatprep.subr.bf16.mxu1 %v5351_v62  ;;  %v5441_v62 = vld [vmem:[#allocation8 + $0x5e4] ss:$24 sps:$4 sm:$0xff]  }
  0xf0   :  { %2348 = vmatpush2.bf16.msra.mxu0 %v5346_v63  ;;  %v5436_v63 = vld [vmem:[#allocation8 + $0x2e0] ss:$24 sps:$4 sm:$0xff]  }
  0xf1   :  { %2391 = vmatpush2.bf16.msra.mxu1 %v5349_v0  ;;  %2349 = vmatprep.subr.bf16.mxu0 %v5354_v1  ;;  %v5439_v0 = vld [vmem:[#allocation8 + $0x5e0] ss:$24 sps:$4 sm:$0xff]   ;;  %v5444_v1 = vld [vmem:[#allocation8 + $0x2b4] ss:$24 sps:$4 sm:$0xff]  }
  0xf2   :  { %2392 = vmatprep.subr.bf16.mxu1 %v5357_v2  ;;  %v5447_v2 = vld [vmem:[#allocation8 + $0x5b4] ss:$24 sps:$4 sm:$0xff]  }
  0xf4   :  { %2350 = vmatpush2.bf16.msra.mxu0 %v5352_v3  ;;  %v5442_v3 = vld [vmem:[#allocation8 + $0x2b0] ss:$24 sps:$4 sm:$0xff]  }
  0xf5   :  { %2393 = vmatpush2.bf16.msra.mxu1 %v5355_v4  ;;  %2351 = vmatprep.subr.bf16.mxu0 %v5360_v5  ;;  %v5445_v4 = vld [vmem:[#allocation8 + $0x5b0] ss:$24 sps:$4 sm:$0xff]   ;;  %v5450_v5 = vld [vmem:[#allocation8 + $0x284] ss:$24 sps:$4 sm:$0xff]  }
  0xf6   :  { %2394 = vmatprep.subr.bf16.mxu1 %v5363_v6  ;;  %v5453_v6 = vld [vmem:[#allocation8 + $0x584] ss:$24 sps:$4 sm:$0xff]  }
  0xf8   :  { %2352 = vmatpush2.bf16.msra.mxu0 %v5358_v7  ;;  %v5448_v7 = vld [vmem:[#allocation8 + $0x280] ss:$24 sps:$4 sm:$0xff]  }
  0xf9   :  { %2395 = vmatpush2.bf16.msra.mxu1 %v5361_v8  ;;  %2353 = vmatprep.subr.bf16.mxu0 %v5366_v9  ;;  %v5451_v8 = vld [vmem:[#allocation8 + $0x580] ss:$24 sps:$4 sm:$0xff]   ;;  %v5456_v9 = vld [vmem:[#allocation8 + $0x254] ss:$24 sps:$4 sm:$0xff]  }
  0xfa   :  { %2396 = vmatprep.subr.bf16.mxu1 %v5369_v10  ;;  %v5459_v10 = vld [vmem:[#allocation8 + $0x554] ss:$24 sps:$4 sm:$0xff]  }
  0xfc   :  { %2354 = vmatpush2.bf16.msra.mxu0 %v5364_v11  ;;  %v5454_v11 = vld [vmem:[#allocation8 + $0x250] ss:$24 sps:$4 sm:$0xff]  }
  0xfd   :  { %2397 = vmatpush2.bf16.msra.mxu1 %v5367_v14  ;;  %2355 = vmatprep.subr.bf16.mxu0 %v5372_v15  ;;  %v5457_v14 = vld [vmem:[#allocation8 + $0x550] ss:$24 sps:$4 sm:$0xff]   ;;  %v5462_v15 = vld [vmem:[#allocation8 + $0x224] ss:$24 sps:$4 sm:$0xff]  }
  0xfe   :  { %2398 = vmatprep.subr.bf16.mxu1 %v5375_v16  ;;  %v5465_v16 = vld [vmem:[#allocation8 + $0x524] ss:$24 sps:$4 sm:$0xff]  }
 0x100   :  { %2356 = vmatpush2.bf16.msra.mxu0 %v5370_v17  ;;  %v5460_v17 = vld [vmem:[#allocation8 + $0x220] ss:$24 sps:$4 sm:$0xff]  }
 0x101   :  { %2399 = vmatpush2.bf16.msra.mxu1 %v5373_v18  ;;  %2357 = vmatprep.subr.bf16.mxu0 %v5378_v19  ;;  %v5463_v18 = vld [vmem:[#allocation8 + $0x520] ss:$24 sps:$4 sm:$0xff]   ;;  %v5468_v19 = vld [vmem:[#allocation8 + $0x1f4] ss:$24 sps:$4 sm:$0xff]  }
 0x102   :  { %2400 = vmatprep.subr.bf16.mxu1 %v5381_v20  ;;  %v5471_v20 = vld [vmem:[#allocation8 + $0x4f4] ss:$24 sps:$4 sm:$0xff]  }
 0x104   :  { %2358 = vmatpush2.bf16.msra.mxu0 %v5376_v21  ;;  %v5466_v21 = vld [vmem:[#allocation8 + $0x1f0] ss:$24 sps:$4 sm:$0xff]  }
 0x105   :  { %2401 = vmatpush2.bf16.msra.mxu1 %v5379_v22  ;;  %2359 = vmatprep.subr.bf16.mxu0 %v5384_v24  ;;  %v5469_v22 = vld [vmem:[#allocation8 + $0x4f0] ss:$24 sps:$4 sm:$0xff]   ;;  %v5474_v24 = vld [vmem:[#allocation8 + $0x1c4] ss:$24 sps:$4 sm:$0xff]  }
 0x106   :  { %2402 = vmatprep.subr.bf16.mxu1 %v5387_v25  ;;  %v5477_v25 = vld [vmem:[#allocation8 + $0x4c4] ss:$24 sps:$4 sm:$0xff]  }
 0x108   :  { %2360 = vmatpush2.bf16.msra.mxu0 %v5382_v26  ;;  %v5472_v26 = vld [vmem:[#allocation8 + $0x1c0] ss:$24 sps:$4 sm:$0xff]  }
 0x109   :  { %2403 = vmatpush2.bf16.msra.mxu1 %v5385_v27  ;;  %2415 = vmatprep.subr.bf16.mxu0 %v5390_v28  ;;  %v5475_v27 = vld [vmem:[#allocation8 + $0x4c0] ss:$24 sps:$4 sm:$0xff]   ;;  %v5480_v28 = vld [vmem:[#allocation8 + $0x194] ss:$24 sps:$4 sm:$0xff]  }
 0x10a   :  { %2458 = vmatprep.subr.bf16.mxu1 %v5393_v29  ;;  %v5483_v29 = vld [vmem:[#allocation8 + $0x494] ss:$24 sps:$4 sm:$0xff]  }
 0x10b   :  { %2362 = vmatmul.mubr.bf16.vlgmr.msra.gmra.mxu0 %v6176_v13 }
 0x10c   :  { %2405 = vmatmul.mubr.bf16.vlgmr.msra.gmra.mxu1 %v6184_v23  ;;  %2416 = vmatpush1.bf16.msra.mxu0 %v5388_v30  ;;  %v5478_v30 = vld [vmem:[#allocation8 + $0x190] ss:$24 sps:$4 sm:$0xff]  }
 0x10d   :  { %2459 = vmatpush1.bf16.msra.mxu1 %v5391_v31  ;;  %2417 = vmatprep.subr.bf16.mxu0 %v5396_v32  ;;  %v5481_v31 = vld [vmem:[#allocation8 + $0x490] ss:$24 sps:$4 sm:$0xff]   ;;  %v5486_v32 = vld [vmem:[#allocation8 + $0x764] ss:$24 sps:$4 sm:$0xff]  }
 0x10e   :  { %2460 = vmatprep.subr.bf16.mxu1 %v5399_v33  ;;  %2447 = vmatprep.mubr.bf16.mxu0 %v6168_v53  ;;  %v5415_v53 = vld [vmem:[#allocation8 + $0x3a0] ss:$24 sps:$4 sm:$0xff]   ;;  %v5489_v33 = vld [vmem:[#allocation7 + $0x154] ss:$24 sps:$4 sm:$0xff]  }
 0x10f   :  { %2490 = vmatprep.mubr.bf16.mxu1 %v6170_v54  ;;  %v5420_v54 = vld [vmem:[#allocation8 + $0x74] ss:$24 sps:$4 sm:$0xff]  }
 0x110   :  { %2418 = vmatpush1.bf16.msra.mxu0 %v5394_v34  ;;  %v5484_v34 = vld [vmem:[#allocation8 + $0x760] ss:$24 sps:$4 sm:$0xff]  }
 0x111   :  { %2461 = vmatpush1.bf16.msra.mxu1 %v5397_v35  ;;  %2419 = vmatprep.subr.bf16.mxu0 %v5402_v36  ;;  %v5487_v35 = vld [vmem:[#allocation7 + $0x150] ss:$24 sps:$4 sm:$0xff]  }
 0x112   :  { %2462 = vmatprep.subr.bf16.mxu1 %v5405_v37  ;;  %v106_v36 = vld [vmem:[#allocation3 + $0x8] sm:$0xff]  ;;  %v112_v37 = vld [vmem:[#allocation3 + $0x38] sm:$0xff] }
 0x114   :  { %2420 = vmatpush1.bf16.msra.mxu0 %v5400_v38  ;;  %v5492_v38 = vld [vmem:[#allocation8 + $0x734] ss:$24 sps:$4 sm:$0xff]  }
 0x115   :  { %2463 = vmatpush1.bf16.msra.mxu1 %v5403_v39  ;;  %2421 = vmatprep.subr.bf16.mxu0 %v5408_v40  ;;  %v5495_v39 = vld [vmem:[#allocation7 + $0x124] ss:$24 sps:$4 sm:$0xff]   ;;  %v6194_v40 = vpack.c.bf16 %v112_v37, %v106_v36  ;;  %v111_v37 = vld [vmem:[#allocation3 + $0x30] sm:$0xff] }
 0x116   :  { %2464 = vmatprep.subr.bf16.mxu1 %v5411_v41  ;;  %v5490_v41 = vld [vmem:[#allocation8 + $0x730] ss:$24 sps:$4 sm:$0xff]   ;;  %v105_v36 = vld [vmem:[#allocation3] sm:$0xff] }
 0x118   :  { %2422 = vmatpush1.bf16.msra.mxu0 %v5406_v42  ;;  %v5493_v42 = vld [vmem:[#allocation7 + $0x120] ss:$24 sps:$4 sm:$0xff]  }
 0x119   :  { %2465 = vmatpush1.bf16.msra.mxu1 %v5409_v43  ;;  %2423 = vmatprep.subr.bf16.mxu0 %v5414_v45  ;;  %v5498_v43 = vld [vmem:[#allocation8 + $0x704] ss:$24 sps:$4 sm:$0xff]   ;;  %v5501_v45 = vld [vmem:[#allocation7 + $0xf4] ss:$24 sps:$4 sm:$0xff]  }
 0x11a   :  { %2466 = vmatprep.subr.bf16.mxu1 %v5417_v46  ;;  %v5496_v46 = vld [vmem:[#allocation8 + $0x700] ss:$24 sps:$4 sm:$0xff]  }
 0x11c   :  { %2424 = vmatpush1.bf16.msra.mxu0 %v5412_v47  ;;  %v5499_v47 = vld [vmem:[#allocation7 + $0xf0] ss:$24 sps:$4 sm:$0xff]  }
 0x11d   :  { %2467 = vmatpush1.bf16.msra.mxu1 %v5415_v53  ;;  %2425 = vmatprep.subr.bf16.mxu0 %v5420_v54  ;;  %v5504_v53 = vld [vmem:[#allocation8 + $0x6d4] ss:$24 sps:$4 sm:$0xff]   ;;  %v5505_v54 = vld [vmem:[#allocation7 + $0xc0] ss:$24 sps:$4 sm:$0xff]  }
 0x11e   :  { %2468 = vmatprep.subr.bf16.mxu1 %v5423_v48  ;;  %v5510_v48 = vld [vmem:[#allocation8 + $0x6a4] ss:$24 sps:$4 sm:$0xff]  }
 0x120   :  { %2426 = vmatpush1.bf16.msra.mxu0 %v5418_v49  ;;  %v5513_v49 = vld [vmem:[#allocation7 + $0x94] ss:$24 sps:$4 sm:$0xff]  }
 0x121   :  { %2469 = vmatpush1.bf16.msra.mxu1 %v5421_v50  ;;  %2427 = vmatprep.subr.bf16.mxu0 %v5426_v51  ;;  %v5508_v50 = vld [vmem:[#allocation8 + $0x6a0] ss:$24 sps:$4 sm:$0xff]   ;;  %v5516_v51 = vld [vmem:[#allocation8 + $0x674] ss:$24 sps:$4 sm:$0xff]  }
 0x122   :  { %2470 = vmatprep.subr.bf16.mxu1 %v5429_v52  ;;  %v5519_v52 = vld [vmem:[#allocation7 + $0x64] ss:$24 sps:$4 sm:$0xff]  }
 0x124   :  { %2428 = vmatpush1.bf16.msra.mxu0 %v5424_v55  ;;  %v5514_v55 = vld [vmem:[#allocation8 + $0x670] ss:$24 sps:$4 sm:$0xff]  }
 0x125   :  { %2471 = vmatpush1.bf16.msra.mxu1 %v5427_v56  ;;  %2429 = vmatprep.subr.bf16.mxu0 %v5432_v57  ;;  %v5517_v56 = vld [vmem:[#allocation7 + $0x60] ss:$24 sps:$4 sm:$0xff]   ;;  %v5522_v57 = vld [vmem:[#allocation8 + $0x644] ss:$24 sps:$4 sm:$0xff]  }
 0x126   :  { %2472 = vmatprep.subr.bf16.mxu1 %v5435_v58  ;;  %v5525_v58 = vld [vmem:[#allocation7 + $0x34] ss:$24 sps:$4 sm:$0xff]  }
 0x128   :  { %2430 = vmatpush1.bf16.msra.mxu0 %v5430_v59  ;;  %v5520_v59 = vld [vmem:[#allocation8 + $0x640] ss:$24 sps:$4 sm:$0xff]  }
 0x129   :  { %2473 = vmatpush1.bf16.msra.mxu1 %v5433_v60  ;;  %2431 = vmatprep.subr.bf16.mxu0 %v5438_v61  ;;  %v5523_v60 = vld [vmem:[#allocation7 + $0x30] ss:$24 sps:$4 sm:$0xff]   ;;  %v5528_v61 = vld [vmem:[#allocation8 + $0x614] ss:$24 sps:$4 sm:$0xff]  }
 0x12a   :  { %2474 = vmatprep.subr.bf16.mxu1 %v5441_v62  ;;  %v5531_v62 = vld [vmem:[#allocation7 + $0x4] ss:$24 sps:$4 sm:$0xff]  }
 0x12c   :  { %2432 = vmatpush2.bf16.msra.mxu0 %v5436_v63  ;;  %v5526_v63 = vld [vmem:[#allocation8 + $0x610] ss:$24 sps:$4 sm:$0xff]  }
 0x12d   :  { %2475 = vmatpush2.bf16.msra.mxu1 %v5439_v0  ;;  %2433 = vmatprep.subr.bf16.mxu0 %v5444_v1  ;;  %v5529_v0 = vld [vmem:[#allocation7] ss:$24 sps:$4 sm:$0xff]   ;;  %v5534_v1 = vld [vmem:[#allocation8 + $0x8e4] ss:$24 sps:$4 sm:$0xff]  }
 0x12e   :  { %2476 = vmatprep.subr.bf16.mxu1 %v5447_v2  ;;  %v5537_v2 = vld [vmem:[#allocation7 + $0x2d4] ss:$24 sps:$4 sm:$0xff]  }
 0x130   :  { %2434 = vmatpush2.bf16.msra.mxu0 %v5442_v3  ;;  %v5532_v3 = vld [vmem:[#allocation8 + $0x8e0] ss:$24 sps:$4 sm:$0xff]  }
 0x131   :  { %2477 = vmatpush2.bf16.msra.mxu1 %v5445_v4  ;;  %2435 = vmatprep.subr.bf16.mxu0 %v5450_v5  ;;  %v5535_v4 = vld [vmem:[#allocation7 + $0x2d0] ss:$24 sps:$4 sm:$0xff]   ;;  %v5540_v5 = vld [vmem:[#allocation8 + $0x8b4] ss:$24 sps:$4 sm:$0xff]  }
 0x132   :  { %2478 = vmatprep.subr.bf16.mxu1 %v5453_v6  ;;  %v5543_v6 = vld [vmem:[#allocation7 + $0x2a4] ss:$24 sps:$4 sm:$0xff]  }
 0x134   :  { %2436 = vmatpush2.bf16.msra.mxu0 %v5448_v7  ;;  %v5538_v7 = vld [vmem:[#allocation8 + $0x8b0] ss:$24 sps:$4 sm:$0xff]  }
 0x135   :  { %2479 = vmatpush2.bf16.msra.mxu1 %v5451_v8  ;;  %2437 = vmatprep.subr.bf16.mxu0 %v5456_v9  ;;  %v5541_v8 = vld [vmem:[#allocation7 + $0x2a0] ss:$24 sps:$4 sm:$0xff]   ;;  %v5546_v9 = vld [vmem:[#allocation8 + $0x884] ss:$24 sps:$4 sm:$0xff]  }
 0x136   :  { %2480 = vmatprep.subr.bf16.mxu1 %v5459_v10  ;;  %v5549_v10 = vld [vmem:[#allocation7 + $0x274] ss:$24 sps:$4 sm:$0xff]  }
 0x138   :  { %2438 = vmatpush2.bf16.msra.mxu0 %v5454_v11  ;;  %v5544_v11 = vld [vmem:[#allocation8 + $0x880] ss:$24 sps:$4 sm:$0xff]  }
 0x139   :  { %2481 = vmatpush2.bf16.msra.mxu1 %v5457_v14  ;;  %2439 = vmatprep.subr.bf16.mxu0 %v5462_v15  ;;  %v5547_v14 = vld [vmem:[#allocation7 + $0x270] ss:$24 sps:$4 sm:$0xff]   ;;  %v5552_v15 = vld [vmem:[#allocation8 + $0x854] ss:$24 sps:$4 sm:$0xff]  }
 0x13a   :  { %2482 = vmatprep.subr.bf16.mxu1 %v5465_v16  ;;  %v5555_v16 = vld [vmem:[#allocation7 + $0x244] ss:$24 sps:$4 sm:$0xff]  }
 0x13c   :  { %2440 = vmatpush2.bf16.msra.mxu0 %v5460_v17  ;;  %v5550_v17 = vld [vmem:[#allocation8 + $0x850] ss:$24 sps:$4 sm:$0xff]  }
 0x13d   :  { %2483 = vmatpush2.bf16.msra.mxu1 %v5463_v18  ;;  %2441 = vmatprep.subr.bf16.mxu0 %v5468_v19  ;;  %v5553_v18 = vld [vmem:[#allocation7 + $0x240] ss:$24 sps:$4 sm:$0xff]   ;;  %v5558_v19 = vld [vmem:[#allocation8 + $0x824] ss:$24 sps:$4 sm:$0xff]  }
 0x13e   :  { %2484 = vmatprep.subr.bf16.mxu1 %v5471_v20  ;;  %v5561_v20 = vld [vmem:[#allocation7 + $0x214] ss:$24 sps:$4 sm:$0xff]  }
 0x140   :  { %2442 = vmatpush2.bf16.msra.mxu0 %v5466_v21  ;;  %v5556_v21 = vld [vmem:[#allocation8 + $0x820] ss:$24 sps:$4 sm:$0xff]  }
 0x141   :  { %2485 = vmatpush2.bf16.msra.mxu1 %v5469_v22  ;;  %2443 = vmatprep.subr.bf16.mxu0 %v5474_v24  ;;  %v5559_v22 = vld [vmem:[#allocation7 + $0x210] ss:$24 sps:$4 sm:$0xff]   ;;  %v5564_v24 = vld [vmem:[#allocation8 + $0x7f4] ss:$24 sps:$4 sm:$0xff]  }
 0x142   :  { %2486 = vmatprep.subr.bf16.mxu1 %v5477_v25  ;;  %v5567_v25 = vld [vmem:[#allocation7 + $0x1e4] ss:$24 sps:$4 sm:$0xff]  }
 0x144   :  { %2444 = vmatpush2.bf16.msra.mxu0 %v5472_v26  ;;  %v5562_v26 = vld [vmem:[#allocation8 + $0x7f0] ss:$24 sps:$4 sm:$0xff]  }
 0x145   :  { %2487 = vmatpush2.bf16.msra.mxu1 %v5475_v27  ;;  %2445 = vmatprep.subr.bf16.mxu0 %v5480_v28  ;;  %v5565_v27 = vld [vmem:[#allocation7 + $0x1e0] ss:$24 sps:$4 sm:$0xff]   ;;  %v5570_v28 = vld [vmem:[#allocation8 + $0x7c4] ss:$24 sps:$4 sm:$0xff]  }
 0x146   :  { %2488 = vmatprep.subr.bf16.mxu1 %v5483_v29  ;;  %v5573_v29 = vld [vmem:[#allocation7 + $0x1b4] ss:$24 sps:$4 sm:$0xff]  }
 0x148   :  { %2446 = vmatpush2.bf16.msra.mxu0 %v5478_v30  ;;  %v5568_v30 = vld [vmem:[#allocation8 + $0x7c0] ss:$24 sps:$4 sm:$0xff]  }
 0x149   :  { %2489 = vmatpush2.bf16.msra.mxu1 %v5481_v31  ;;  %2501 = vmatprep.subr.bf16.mxu0 %v5486_v32  ;;  %v5571_v31 = vld [vmem:[#allocation7 + $0x1b0] ss:$24 sps:$4 sm:$0xff]   ;;  %v5576_v32 = vld [vmem:[#allocation8 + $0x794] ss:$24 sps:$4 sm:$0xff]  }
 0x14a   :  { %3984 = vmatprep.subr.bf16.mxu1 %v5489_v33  ;;  %v5579_v33 = vld [vmem:[#allocation7 + $0x184] ss:$24 sps:$4 sm:$0xff]  }
 0x14b   :  { %2448 = vmatmul.mubr.bf16.vlgmr.msra.gmra.mxu0 %v6174_v12  ;;  %v5507_v12 = vld [vmem:[#allocation7 + $0xc4] ss:$24 sps:$4 sm:$0xff]  }
 0x14c   :  { %2491 = vmatmul.mubr.bf16.vlgmr.msra.gmra.mxu1 %v6176_v13  ;;  %2502 = vmatpush1.bf16.msra.mxu0 %v5484_v34  ;;  %v5502_v13 = vld [vmem:[#allocation8 + $0x6d0] ss:$24 sps:$4 sm:$0xff]  }
 0x14d   :  { %3985 = vmatpush1.bf16.msra.mxu1 %v5487_v35  ;;  %2503 = vmatprep.subr.bf16.mxu0 %v5492_v38  ;;  %v5574_v34 = vld [vmem:[#allocation8 + $0x790] ss:$24 sps:$4 sm:$0xff]   ;;  %v5577_v35 = vld [vmem:[#allocation7 + $0x180] ss:$24 sps:$4 sm:$0xff]   ;;  %v5582_v38 = vld [vmem:[#allocation7 + $0x454] ss:$24 sps:$4 sm:$0xff]  }
 0x14e   :  { %3986 = vmatprep.subr.bf16.mxu1 %v5495_v39  ;;  %2533 = vmatprep.mubr.bf16.mxu0 %v6181_v44  ;;  %v5511_v44 = vld [vmem:[#allocation7 + $0x90] ss:$24 sps:$4 sm:$0xff]   ;;  %v5585_v39 = vld [vmem:[#allocation7 + $0x754] ss:$24 sps:$4 sm:$0xff]  }
 0x14f   :  { %4016 = vmatprep.mubr.bf16.mxu1 %v6194_v40 }
 0x150   :  { %2504 = vmatpush1.bf16.msra.mxu0 %v5490_v41  ;;  %v108_v41 = vld [vmem:[#allocation3 + $0x18] sm:$0xff] }
 0x151   :  { %3987 = vmatpush1.bf16.msra.mxu1 %v5493_v42  ;;  %2505 = vmatprep.subr.bf16.mxu0 %v5498_v43  ;;  %v114_v42 = vld [vmem:[#allocation3 + $0x48] sm:$0xff] }
 0x152   :  { %3988 = vmatprep.subr.bf16.mxu1 %v5501_v45  ;;  %v110_v43 = vld [vmem:[#allocation3 + $0x28] sm:$0xff]  ;;  %v116_v45 = vld [vmem:[#allocation3 + $0x58] sm:$0xff] }
 0x154   :  { %2506 = vmatpush1.bf16.msra.mxu0 %v5496_v46  ;;  %v5580_v46 = vld [vmem:[#allocation7 + $0x450] ss:$24 sps:$4 sm:$0xff]  }
 0x155   :  { %3989 = vmatpush1.bf16.msra.mxu1 %v5499_v47  ;;  %2507 = vmatprep.subr.bf16.mxu0 %v5504_v53  ;;  %v5583_v47 = vld [vmem:[#allocation7 + $0x750] ss:$24 sps:$4 sm:$0xff]   ;;  %v6200_v53 = vpack.c.bf16 %v111_v37, %v105_v36  ;;  %v5658_v36 = vld [vmem:[#allocation7 + $0x4e0] ss:$24 sps:$4 sm:$0xff]  }
 0x156   :  { %3990 = vmatprep.subr.bf16.mxu1 %v5507_v12  ;;  %v5588_v12 = vld [vmem:[#allocation7 + $0x424] ss:$24 sps:$4 sm:$0xff]   ;;  %v5661_v37 = vld [vmem:[#allocation7 + $0x7e0] ss:$24 sps:$4 sm:$0xff]  }
 0x158   :  { %2508 = vmatpush1.bf16.msra.mxu0 %v5502_v13  ;;  %v5591_v13 = vld [vmem:[#allocation7 + $0x724] ss:$24 sps:$4 sm:$0xff]  }
 0x159   :  { %3991 = vmatpush1.bf16.msra.mxu1 %v5505_v54  ;;  %2509 = vmatprep.subr.bf16.mxu0 %v5510_v48  ;;  %v5586_v54 = vld [vmem:[#allocation7 + $0x420] ss:$24 sps:$4 sm:$0xff]  }
 0x15a   :  { %3992 = vmatprep.subr.bf16.mxu1 %v5513_v49  ;;  %v5589_v48 = vld [vmem:[#allocation7 + $0x720] ss:$24 sps:$4 sm:$0xff]   ;;  %v6202_v49 = vpack.c.bf16 %v114_v42, %v108_v41  ;;  %v5664_v41 = vld [vmem:[#allocation7 + $0x4b0] ss:$24 sps:$4 sm:$0xff]  }
 0x15b   :  { %v5667_v42 = vld [vmem:[#allocation7 + $0x7b0] ss:$24 sps:$4 sm:$0xff]  }
 0x15c   :  { %2510 = vmatpush1.bf16.msra.mxu0 %v5508_v50  ;;  %v6204_v50 = vpack.c.bf16 %v116_v45, %v110_v43  ;;  %v5672_v43 = vld [vmem:[#allocation7 + $0x484] ss:$24 sps:$4 sm:$0xff]  }
 0x15d   :  { %3993 = vmatpush1.bf16.msra.mxu1 %v5511_v44  ;;  %2511 = vmatprep.subr.bf16.mxu0 %v5516_v51  ;;  %v5594_v44 = vld [vmem:[#allocation7 + $0x3f4] ss:$24 sps:$4 sm:$0xff]   ;;  %v5675_v45 = vld [vmem:[#allocation7 + $0x784] ss:$24 sps:$4 sm:$0xff]  }
 0x15e   :  { %3994 = vmatprep.subr.bf16.mxu1 %v5519_v52  ;;  %v5597_v51 = vld [vmem:[#allocation7 + $0x6f4] ss:$24 sps:$4 sm:$0xff]   ;;  %v5592_v52 = vld [vmem:[#allocation7 + $0x3f0] ss:$24 sps:$4 sm:$0xff]  }
 0x160   :  { %2512 = vmatpush1.bf16.msra.mxu0 %v5514_v55  ;;  %v5595_v55 = vld [vmem:[#allocation7 + $0x6f0] ss:$24 sps:$4 sm:$0xff]  }
 0x161   :  { %3995 = vmatpush1.bf16.msra.mxu1 %v5517_v56  ;;  %2513 = vmatprep.subr.bf16.mxu0 %v5522_v57  ;;  %v5600_v56 = vld [vmem:[#allocation7 + $0x3c4] ss:$24 sps:$4 sm:$0xff]   ;;  %v5598_v57 = vld [vmem:[#allocation7 + $0x3c0] ss:$24 sps:$4 sm:$0xff]  }
 0x162   :  { %3996 = vmatprep.subr.bf16.mxu1 %v5525_v58  ;;  %v5601_v58 = vld [vmem:[#allocation7 + $0x6c0] ss:$24 sps:$4 sm:$0xff]  }
 0x164   :  { %2514 = vmatpush1.bf16.msra.mxu0 %v5520_v59  ;;  %v5606_v59 = vld [vmem:[#allocation7 + $0x394] ss:$24 sps:$4 sm:$0xff]  }
 0x165   :  { %3997 = vmatpush1.bf16.msra.mxu1 %v5523_v60  ;;  %2515 = vmatprep.subr.bf16.mxu0 %v5528_v61  ;;  %v5609_v60 = vld [vmem:[#allocation7 + $0x694] ss:$24 sps:$4 sm:$0xff]   ;;  %v5604_v61 = vld [vmem:[#allocation7 + $0x390] ss:$24 sps:$4 sm:$0xff]  }
 0x166   :  { %3998 = vmatprep.subr.bf16.mxu1 %v5531_v62  ;;  %v5607_v62 = vld [vmem:[#allocation7 + $0x690] ss:$24 sps:$4 sm:$0xff]  }
 0x168   :  { %2516 = vmatpush1.bf16.msra.mxu0 %v5526_v63  ;;  %v5612_v63 = vld [vmem:[#allocation7 + $0x364] ss:$24 sps:$4 sm:$0xff]  }
 0x169   :  { %3999 = vmatpush1.bf16.msra.mxu1 %v5529_v0  ;;  %2517 = vmatprep.subr.bf16.mxu0 %v5534_v1  ;;  %v5615_v0 = vld [vmem:[#allocation7 + $0x664] ss:$24 sps:$4 sm:$0xff]   ;;  %v5610_v1 = vld [vmem:[#allocation7 + $0x360] ss:$24 sps:$4 sm:$0xff]  }
 0x16a   :  { %4000 = vmatprep.subr.bf16.mxu1 %v5537_v2  ;;  %v5613_v2 = vld [vmem:[#allocation7 + $0x660] ss:$24 sps:$4 sm:$0xff]  }
 0x16c   :  { %2518 = vmatpush2.bf16.msra.mxu0 %v5532_v3  ;;  %v5618_v3 = vld [vmem:[#allocation7 + $0x334] ss:$24 sps:$4 sm:$0xff]  }
 0x16d   :  { %4001 = vmatpush2.bf16.msra.mxu1 %v5535_v4  ;;  %2519 = vmatprep.subr.bf16.mxu0 %v5540_v5  ;;  %v5621_v4 = vld [vmem:[#allocation7 + $0x634] ss:$24 sps:$4 sm:$0xff]   ;;  %v5616_v5 = vld [vmem:[#allocation7 + $0x330] ss:$24 sps:$4 sm:$0xff]  }
 0x16e   :  { %4002 = vmatprep.subr.bf16.mxu1 %v5543_v6  ;;  %v5619_v6 = vld [vmem:[#allocation7 + $0x630] ss:$24 sps:$4 sm:$0xff]  }
 0x170   :  { %2520 = vmatpush2.bf16.msra.mxu0 %v5538_v7  ;;  %v5624_v7 = vld [vmem:[#allocation7 + $0x304] ss:$24 sps:$4 sm:$0xff]  }
 0x171   :  { %4003 = vmatpush2.bf16.msra.mxu1 %v5541_v8  ;;  %2521 = vmatprep.subr.bf16.mxu0 %v5546_v9  ;;  %v5627_v8 = vld [vmem:[#allocation7 + $0x604] ss:$24 sps:$4 sm:$0xff]   ;;  %v5622_v9 = vld [vmem:[#allocation7 + $0x300] ss:$24 sps:$4 sm:$0xff]  }
 0x172   :  { %4004 = vmatprep.subr.bf16.mxu1 %v5549_v10  ;;  %v5625_v10 = vld [vmem:[#allocation7 + $0x600] ss:$24 sps:$4 sm:$0xff]  }
 0x174   :  { %2522 = vmatpush2.bf16.msra.mxu0 %v5544_v11  ;;  %v5630_v11 = vld [vmem:[#allocation7 + $0x5d4] ss:$24 sps:$4 sm:$0xff]  }
 0x175   :  { %4005 = vmatpush2.bf16.msra.mxu1 %v5547_v14  ;;  %2523 = vmatprep.subr.bf16.mxu0 %v5552_v15  ;;  %v5633_v14 = vld [vmem:[#allocation7 + $0x8d4] ss:$24 sps:$4 sm:$0xff]   ;;  %v5628_v15 = vld [vmem:[#allocation7 + $0x5d0] ss:$24 sps:$4 sm:$0xff]  }
 0x176   :  { %4006 = vmatprep.subr.bf16.mxu1 %v5555_v16  ;;  %v5631_v16 = vld [vmem:[#allocation7 + $0x8d0] ss:$24 sps:$4 sm:$0xff]  }
 0x178   :  { %2524 = vmatpush2.bf16.msra.mxu0 %v5550_v17  ;;  %v5636_v17 = vld [vmem:[#allocation7 + $0x5a4] ss:$24 sps:$4 sm:$0xff]  }
 0x179   :  { %4007 = vmatpush2.bf16.msra.mxu1 %v5553_v18  ;;  %2525 = vmatprep.subr.bf16.mxu0 %v5558_v19  ;;  %v5639_v18 = vld [vmem:[#allocation7 + $0x8a4] ss:$24 sps:$4 sm:$0xff]   ;;  %v5634_v19 = vld [vmem:[#allocation7 + $0x5a0] ss:$24 sps:$4 sm:$0xff]  }
 0x17a   :  { %4008 = vmatprep.subr.bf16.mxu1 %v5561_v20  ;;  %v5637_v20 = vld [vmem:[#allocation7 + $0x8a0] ss:$24 sps:$4 sm:$0xff]  }
 0x17c   :  { %2526 = vmatpush2.bf16.msra.mxu0 %v5556_v21  ;;  %v5642_v21 = vld [vmem:[#allocation7 + $0x574] ss:$24 sps:$4 sm:$0xff]  }
 0x17d   :  { %4009 = vmatpush2.bf16.msra.mxu1 %v5559_v22  ;;  %2527 = vmatprep.subr.bf16.mxu0 %v5564_v24  ;;  %v5645_v22 = vld [vmem:[#allocation7 + $0x874] ss:$24 sps:$4 sm:$0xff]   ;;  %v5640_v24 = vld [vmem:[#allocation7 + $0x570] ss:$24 sps:$4 sm:$0xff]  }
 0x17e   :  { %4010 = vmatprep.subr.bf16.mxu1 %v5567_v25  ;;  %v5643_v25 = vld [vmem:[#allocation7 + $0x870] ss:$24 sps:$4 sm:$0xff]  }
 0x180   :  { %2528 = vmatpush2.bf16.msra.mxu0 %v5562_v26  ;;  %v5648_v26 = vld [vmem:[#allocation7 + $0x544] ss:$24 sps:$4 sm:$0xff]  }
 0x181   :  { %4011 = vmatpush2.bf16.msra.mxu1 %v5565_v27  ;;  %2529 = vmatprep.subr.bf16.mxu0 %v5570_v28  ;;  %v5651_v27 = vld [vmem:[#allocation7 + $0x844] ss:$24 sps:$4 sm:$0xff]   ;;  %v5646_v28 = vld [vmem:[#allocation7 + $0x540] ss:$24 sps:$4 sm:$0xff]  }
 0x182   :  { %4012 = vmatprep.subr.bf16.mxu1 %v5573_v29  ;;  %v5649_v29 = vld [vmem:[#allocation7 + $0x840] ss:$24 sps:$4 sm:$0xff]  }
 0x184   :  { %2530 = vmatpush2.bf16.msra.mxu0 %v5568_v30  ;;  %v5654_v30 = vld [vmem:[#allocation7 + $0x514] ss:$24 sps:$4 sm:$0xff]  }
 0x185   :  { %4013 = vmatpush2.bf16.msra.mxu1 %v5571_v31  ;;  %2531 = vmatprep.subr.bf16.mxu0 %v5576_v32  ;;  %v5657_v31 = vld [vmem:[#allocation7 + $0x814] ss:$24 sps:$4 sm:$0xff]   ;;  %v5652_v32 = vld [vmem:[#allocation7 + $0x510] ss:$24 sps:$4 sm:$0xff]  }
 0x186   :  { %4014 = vmatprep.subr.bf16.mxu1 %v5579_v33  ;;  %v5655_v33 = vld [vmem:[#allocation7 + $0x810] ss:$24 sps:$4 sm:$0xff]  }
 0x188   :  { %2532 = vmatpush2.bf16.msra.mxu0 %v5574_v34  ;;  %v5660_v34 = vld [vmem:[#allocation7 + $0x4e4] ss:$24 sps:$4 sm:$0xff]  }
 0x189   :  { %4015 = vmatpush2.bf16.msra.mxu1 %v5577_v35  ;;  %4027 = vmatprep.subr.bf16.mxu0 %v5582_v38  ;;  %v5663_v35 = vld [vmem:[#allocation7 + $0x7e4] ss:$24 sps:$4 sm:$0xff]   ;;  %v5666_v38 = vld [vmem:[#allocation7 + $0x4b4] ss:$24 sps:$4 sm:$0xff]  }
 0x18a   :  { %4070 = vmatprep.subr.bf16.mxu1 %v5585_v39  ;;  %v5669_v39 = vld [vmem:[#allocation7 + $0x7b4] ss:$24 sps:$4 sm:$0xff]  }
 0x18b   :  { %2534 = vmatmul.mubr.bf16.vlgmr.msra.gmra.mxu0 %v6184_v23  ;;  %v5603_v23 = vld [vmem:[#allocation7 + $0x6c4] ss:$24 sps:$4 sm:$0xff]  }
 0x18c   :  { %4017 = vmatmul.mubr.bf16.vlgmr.msra.gmra.mxu1 %v6200_v53  ;;  %4028 = vmatpush1.bf16.msra.mxu0 %v5580_v46  ;;  %v5670_v46 = vld [vmem:[#allocation7 + $0x480] ss:$24 sps:$4 sm:$0xff]  }
 0x18d   :  { %4071 = vmatpush1.bf16.msra.mxu1 %v5583_v47  ;;  %4029 = vmatprep.subr.bf16.mxu0 %v5588_v12  ;;  %v5673_v47 = vld [vmem:[#allocation7 + $0x780] ss:$24 sps:$4 sm:$0xff]   ;;  %v107_v12 = vld [vmem:[#allocation3 + $0x10] sm:$0xff] }
 0x18e   :  { %4072 = vmatprep.subr.bf16.mxu1 %v5591_v13  ;;  %4059 = vmatprep.mubr.bf16.mxu0 %v6202_v49  ;;  %v113_v13 = vld [vmem:[#allocation3 + $0x40] sm:$0xff] }
 0x18f   :  { %4102 = vmatprep.mubr.bf16.mxu1 %v6204_v50 }
 0x190   :  { %4030 = vmatpush1.bf16.msra.mxu0 %v5586_v54  ;;  %v109_v54 = vld [vmem:[#allocation3 + $0x20] sm:$0xff] }
 0x191   :  { %4073 = vmatpush1.bf16.msra.mxu1 %v5589_v48  ;;  %4031 = vmatprep.subr.bf16.mxu0 %v5594_v44  ;;  %v115_v48 = vld [vmem:[#allocation3 + $0x50] sm:$0xff] }
 0x192   :  { %4074 = vmatprep.subr.bf16.mxu1 %v5597_v51  ;;  %v5678_v44 = vld [vmem:[#allocation7 + $0x15c] ss:$24 sps:$4 sm:$0xff]  }
 0x193   :  { %v5681_v51 = vld [vmem:[#allocation7 + $0x45c] ss:$24 sps:$4 sm:$0xff]  }
 0x194   :  { %4032 = vmatpush1.bf16.msra.mxu0 %v5592_v52  ;;  %v6210_v52 = vpack.c.bf16 %v113_v13, %v107_v12  ;;  %v5754_v12 = vld [vmem:[#allocation7 + $0x1e8] ss:$24 sps:$4 sm:$0xff]  }
 0x195   :  { %4075 = vmatpush1.bf16.msra.mxu1 %v5595_v55  ;;  %4033 = vmatprep.subr.bf16.mxu0 %v5600_v56  ;;  %v6212_v55 = vpack.c.bf16 %v115_v48, %v109_v54  ;;  %v5676_v56 = vld [vmem:[#allocation7 + $0x158] ss:$24 sps:$4 sm:$0xff]   ;;  %v5757_v13 = vld [vmem:[#allocation7 + $0x4e8] ss:$24 sps:$4 sm:$0xff]   ;;  %v5762_v54 = vld [vmem:[#allocation7 + $0x1bc] ss:$24 sps:$4 sm:$0xff]  }
 0x196   :  { %4076 = vmatprep.subr.bf16.mxu1 %v5603_v23  ;;  %v5679_v23 = vld [vmem:[#allocation7 + $0x458] ss:$24 sps:$4 sm:$0xff]   ;;  %v5765_v48 = vld [vmem:[#allocation7 + $0x4bc] ss:$24 sps:$4 sm:$0xff]  }
 0x198   :  { %4034 = vmatpush1.bf16.msra.mxu0 %v5598_v57  ;;  %v5684_v57 = vld [vmem:[#allocation7 + $0x12c] ss:$24 sps:$4 sm:$0xff]  }
 0x199   :  { %4077 = vmatpush1.bf16.msra.mxu1 %v5601_v58  ;;  %4035 = vmatprep.subr.bf16.mxu0 %v5606_v59  ;;  %v5687_v58 = vld [vmem:[#allocation7 + $0x42c] ss:$24 sps:$4 sm:$0xff]   ;;  %v5682_v59 = vld [vmem:[#allocation7 + $0x128] ss:$24 sps:$4 sm:$0xff]  }
 0x19a   :  { %4078 = vmatprep.subr.bf16.mxu1 %v5609_v60  ;;  %v5685_v60 = vld [vmem:[#allocation7 + $0x428] ss:$24 sps:$4 sm:$0xff]  }
 0x19c   :  { %4036 = vmatpush1.bf16.msra.mxu0 %v5604_v61  ;;  %v5690_v61 = vld [vmem:[#allocation7 + $0xfc] ss:$24 sps:$4 sm:$0xff]  }
 0x19d   :  { %4079 = vmatpush1.bf16.msra.mxu1 %v5607_v62  ;;  %4037 = vmatprep.subr.bf16.mxu0 %v5612_v63  ;;  %v5693_v62 = vld [vmem:[#allocation7 + $0x3fc] ss:$24 sps:$4 sm:$0xff]   ;;  %v5688_v63 = vld [vmem:[#allocation7 + $0xf8] ss:$24 sps:$4 sm:$0xff]  }
 0x19e   :  { %4080 = vmatprep.subr.bf16.mxu1 %v5615_v0  ;;  %v5691_v0 = vld [vmem:[#allocation7 + $0x3f8] ss:$24 sps:$4 sm:$0xff]  }
 0x1a0   :  { %4038 = vmatpush1.bf16.msra.mxu0 %v5610_v1  ;;  %v5696_v1 = vld [vmem:[#allocation7 + $0xcc] ss:$24 sps:$4 sm:$0xff]  }
 0x1a1   :  { %4081 = vmatpush1.bf16.msra.mxu1 %v5613_v2  ;;  %4039 = vmatprep.subr.bf16.mxu0 %v5618_v3  ;;  %v5699_v2 = vld [vmem:[#allocation7 + $0x3cc] ss:$24 sps:$4 sm:$0xff]   ;;  %v5694_v3 = vld [vmem:[#allocation7 + $0xc8] ss:$24 sps:$4 sm:$0xff]  }
 0x1a2   :  { %4082 = vmatprep.subr.bf16.mxu1 %v5621_v4  ;;  %v5697_v4 = vld [vmem:[#allocation7 + $0x3c8] ss:$24 sps:$4 sm:$0xff]  }
 0x1a4   :  { %4040 = vmatpush1.bf16.msra.mxu0 %v5616_v5  ;;  %v5702_v5 = vld [vmem:[#allocation7 + $0x9c] ss:$24 sps:$4 sm:$0xff]  }
 0x1a5   :  { %4083 = vmatpush1.bf16.msra.mxu1 %v5619_v6  ;;  %4041 = vmatprep.subr.bf16.mxu0 %v5624_v7  ;;  %v5705_v6 = vld [vmem:[#allocation7 + $0x39c] ss:$24 sps:$4 sm:$0xff]   ;;  %v5700_v7 = vld [vmem:[#allocation7 + $0x98] ss:$24 sps:$4 sm:$0xff]  }
 0x1a6   :  { %4084 = vmatprep.subr.bf16.mxu1 %v5627_v8  ;;  %v5703_v8 = vld [vmem:[#allocation7 + $0x398] ss:$24 sps:$4 sm:$0xff]  }
 0x1a8   :  { %4042 = vmatpush1.bf16.msra.mxu0 %v5622_v9  ;;  %v5708_v9 = vld [vmem:[#allocation7 + $0x6c] ss:$24 sps:$4 sm:$0xff]  }
 0x1a9   :  { %4085 = vmatpush1.bf16.msra.mxu1 %v5625_v10  ;;  %4043 = vmatprep.subr.bf16.mxu0 %v5630_v11  ;;  %v5711_v10 = vld [vmem:[#allocation7 + $0x36c] ss:$24 sps:$4 sm:$0xff]   ;;  %v5706_v11 = vld [vmem:[#allocation7 + $0x68] ss:$24 sps:$4 sm:$0xff]  }
 0x1aa   :  { %4086 = vmatprep.subr.bf16.mxu1 %v5633_v14  ;;  %v5709_v14 = vld [vmem:[#allocation7 + $0x368] ss:$24 sps:$4 sm:$0xff]  }
 0x1ac   :  { %4044 = vmatpush2.bf16.msra.mxu0 %v5628_v15  ;;  %v5714_v15 = vld [vmem:[#allocation7 + $0x3c] ss:$24 sps:$4 sm:$0xff]  }
 0x1ad   :  { %4087 = vmatpush2.bf16.msra.mxu1 %v5631_v16  ;;  %4045 = vmatprep.subr.bf16.mxu0 %v5636_v17  ;;  %v5717_v16 = vld [vmem:[#allocation7 + $0x33c] ss:$24 sps:$4 sm:$0xff]   ;;  %v5712_v17 = vld [vmem:[#allocation7 + $0x38] ss:$24 sps:$4 sm:$0xff]  }
 0x1ae   :  { %4088 = vmatprep.subr.bf16.mxu1 %v5639_v18  ;;  %v5715_v18 = vld [vmem:[#allocation7 + $0x338] ss:$24 sps:$4 sm:$0xff]  }
 0x1b0   :  { %4046 = vmatpush2.bf16.msra.mxu0 %v5634_v19  ;;  %v5720_v19 = vld [vmem:[#allocation7 + $0xc] ss:$24 sps:$4 sm:$0xff]  }
 0x1b1   :  { %4089 = vmatpush2.bf16.msra.mxu1 %v5637_v20  ;;  %4047 = vmatprep.subr.bf16.mxu0 %v5642_v21  ;;  %v5723_v20 = vld [vmem:[#allocation7 + $0x30c] ss:$24 sps:$4 sm:$0xff]   ;;  %v5718_v21 = vld [vmem:[#allocation7 + $0x8] ss:$24 sps:$4 sm:$0xff]  }
 0x1b2   :  { %4090 = vmatprep.subr.bf16.mxu1 %v5645_v22  ;;  %v5721_v22 = vld [vmem:[#allocation7 + $0x308] ss:$24 sps:$4 sm:$0xff]  }
 0x1b4   :  { %4048 = vmatpush2.bf16.msra.mxu0 %v5640_v24  ;;  %v5726_v24 = vld [vmem:[#allocation7 + $0x2dc] ss:$24 sps:$4 sm:$0xff]  }
 0x1b5   :  { %4091 = vmatpush2.bf16.msra.mxu1 %v5643_v25  ;;  %4049 = vmatprep.subr.bf16.mxu0 %v5648_v26  ;;  %v5729_v25 = vld [vmem:[#allocation7 + $0x5dc] ss:$24 sps:$4 sm:$0xff]   ;;  %v5724_v26 = vld [vmem:[#allocation7 + $0x2d8] ss:$24 sps:$4 sm:$0xff]  }
 0x1b6   :  { %4092 = vmatprep.subr.bf16.mxu1 %v5651_v27  ;;  %v5727_v27 = vld [vmem:[#allocation7 + $0x5d8] ss:$24 sps:$4 sm:$0xff]  }
 0x1b8   :  { %4050 = vmatpush2.bf16.msra.mxu0 %v5646_v28  ;;  %v5732_v28 = vld [vmem:[#allocation7 + $0x2ac] ss:$24 sps:$4 sm:$0xff]  }
 0x1b9   :  { %4093 = vmatpush2.bf16.msra.mxu1 %v5649_v29  ;;  %4051 = vmatprep.subr.bf16.mxu0 %v5654_v30  ;;  %v5735_v29 = vld [vmem:[#allocation7 + $0x5ac] ss:$24 sps:$4 sm:$0xff]   ;;  %v5730_v30 = vld [vmem:[#allocation7 + $0x2a8] ss:$24 sps:$4 sm:$0xff]  }
 0x1ba   :  { %4094 = vmatprep.subr.bf16.mxu1 %v5657_v31  ;;  %v5733_v31 = vld [vmem:[#allocation7 + $0x5a8] ss:$24 sps:$4 sm:$0xff]  }
 0x1bc   :  { %4052 = vmatpush2.bf16.msra.mxu0 %v5652_v32  ;;  %v5738_v32 = vld [vmem:[#allocation7 + $0x27c] ss:$24 sps:$4 sm:$0xff]  }
 0x1bd   :  { %4095 = vmatpush2.bf16.msra.mxu1 %v5655_v33  ;;  %4053 = vmatprep.subr.bf16.mxu0 %v5660_v34  ;;  %v5741_v33 = vld [vmem:[#allocation7 + $0x57c] ss:$24 sps:$4 sm:$0xff]   ;;  %v5736_v34 = vld [vmem:[#allocation7 + $0x278] ss:$24 sps:$4 sm:$0xff]  }
 0x1be   :  { %4096 = vmatprep.subr.bf16.mxu1 %v5663_v35  ;;  %v5739_v35 = vld [vmem:[#allocation7 + $0x578] ss:$24 sps:$4 sm:$0xff]  }
 0x1c0   :  { %4054 = vmatpush2.bf16.msra.mxu0 %v5658_v36  ;;  %v5744_v36 = vld [vmem:[#allocation7 + $0x24c] ss:$24 sps:$4 sm:$0xff]  }
 0x1c1   :  { %4097 = vmatpush2.bf16.msra.mxu1 %v5661_v37  ;;  %4055 = vmatprep.subr.bf16.mxu0 %v5666_v38  ;;  %v5747_v37 = vld [vmem:[#allocation7 + $0x54c] ss:$24 sps:$4 sm:$0xff]   ;;  %v5742_v38 = vld [vmem:[#allocation7 + $0x248] ss:$24 sps:$4 sm:$0xff]  }
 0x1c2   :  { %4098 = vmatprep.subr.bf16.mxu1 %v5669_v39  ;;  %v5745_v39 = vld [vmem:[#allocation7 + $0x548] ss:$24 sps:$4 sm:$0xff]  }
 0x1c4   :  { %4056 = vmatpush2.bf16.msra.mxu0 %v5664_v41  ;;  %v5750_v41 = vld [vmem:[#allocation7 + $0x21c] ss:$24 sps:$4 sm:$0xff]  }
 0x1c5   :  { %4099 = vmatpush2.bf16.msra.mxu1 %v5667_v42  ;;  %4057 = vmatprep.subr.bf16.mxu0 %v5672_v43  ;;  %v5753_v42 = vld [vmem:[#allocation7 + $0x51c] ss:$24 sps:$4 sm:$0xff]   ;;  %v5748_v43 = vld [vmem:[#allocation7 + $0x218] ss:$24 sps:$4 sm:$0xff]  }
 0x1c6   :  { %4100 = vmatprep.subr.bf16.mxu1 %v5675_v45  ;;  %v5751_v45 = vld [vmem:[#allocation7 + $0x518] ss:$24 sps:$4 sm:$0xff]  }
 0x1c8   :  { %4058 = vmatpush2.bf16.msra.mxu0 %v5670_v46  ;;  %v5756_v46 = vld [vmem:[#allocation7 + $0x1ec] ss:$24 sps:$4 sm:$0xff]  }
 0x1c9   :  { %4101 = vmatpush2.bf16.msra.mxu1 %v5673_v47  ;;  %4113 = vmatprep.subr.bf16.mxu0 %v5678_v44  ;;  %v5759_v47 = vld [vmem:[#allocation7 + $0x4ec] ss:$24 sps:$4 sm:$0xff]   ;;  %v5760_v44 = vld [vmem:[#allocation7 + $0x1b8] ss:$24 sps:$4 sm:$0xff]  }
 0x1ca   :  { %4156 = vmatprep.subr.bf16.mxu1 %v5681_v51  ;;  %v5763_v51 = vld [vmem:[#allocation7 + $0x4b8] ss:$24 sps:$4 sm:$0xff]  }
 0x1cb   :  { %4060 = vmatmul.mubr.bf16.vlgmr.msra.gmra.mxu0 %v6210_v52 }
 0x1cc   :  { %4103 = vmatmul.mubr.bf16.vlgmr.msra.gmra.mxu1 %v6212_v55  ;;  %4114 = vmatpush1.bf16.msra.mxu0 %v5676_v56  ;;  %v5768_v56 = vld [vmem:[#allocation7 + $0x18c] ss:$24 sps:$4 sm:$0xff]  }
 0x1cd   :  { %4157 = vmatpush1.bf16.msra.mxu1 %v5679_v23  ;;  %4115 = vmatprep.subr.bf16.mxu0 %v5684_v57  ;;  %v5771_v23 = vld [vmem:[#allocation7 + $0x48c] ss:$24 sps:$4 sm:$0xff]   ;;  %v5766_v57 = vld [vmem:[#allocation7 + $0x188] ss:$24 sps:$4 sm:$0xff]  }
 0x1ce   :  { %4158 = vmatprep.subr.bf16.mxu1 %v5687_v58  ;;  %4145 = vmatprep.mubr.bf16.mxu0 %v6194_v40  ;;  %v5769_v58 = vld [vmem:[#allocation7 + $0x488] ss:$24 sps:$4 sm:$0xff]  }
 0x1cf   :  { %4188 = vmatprep.mubr.bf16.mxu1 %v6202_v49 }
 0x1d0   :  { %4116 = vmatpush1.bf16.msra.mxu0 %v5682_v59  ;;  %v5774_v59 = vld [vmem:[#allocation7 + $0x75c] ss:$24 sps:$4 sm:$0xff]  }
 0x1d1   :  { %4159 = vmatpush1.bf16.msra.mxu1 %v5685_v60  ;;  %4117 = vmatprep.subr.bf16.mxu0 %v5690_v61  ;;  %v5777_v60 = vld [vmem:[#allocation7 + $0x164] ss:$24 sps:$4 sm:$0xff]   ;;  %v5772_v61 = vld [vmem:[#allocation7 + $0x758] ss:$24 sps:$4 sm:$0xff]  }
 0x1d2   :  { %4160 = vmatprep.subr.bf16.mxu1 %v5693_v62  ;;  %v5775_v62 = vld [vmem:[#allocation7 + $0x160] ss:$24 sps:$4 sm:$0xff]  }
 0x1d4   :  { %4118 = vmatpush1.bf16.msra.mxu0 %v5688_v63  ;;  %v5780_v63 = vld [vmem:[#allocation7 + $0x72c] ss:$24 sps:$4 sm:$0xff]  }
 0x1d5   :  { %4161 = vmatpush1.bf16.msra.mxu1 %v5691_v0  ;;  %4119 = vmatprep.subr.bf16.mxu0 %v5696_v1  ;;  %v5783_v0 = vld [vmem:[#allocation7 + $0x134] ss:$24 sps:$4 sm:$0xff]   ;;  %v5778_v1 = vld [vmem:[#allocation7 + $0x728] ss:$24 sps:$4 sm:$0xff]  }
 0x1d6   :  { %4162 = vmatprep.subr.bf16.mxu1 %v5699_v2  ;;  %v5781_v2 = vld [vmem:[#allocation7 + $0x130] ss:$24 sps:$4 sm:$0xff]  }
 0x1d8   :  { %4120 = vmatpush1.bf16.msra.mxu0 %v5694_v3  ;;  %v5786_v3 = vld [vmem:[#allocation7 + $0x6fc] ss:$24 sps:$4 sm:$0xff]  }
 0x1d9   :  { %4163 = vmatpush1.bf16.msra.mxu1 %v5697_v4  ;;  %4121 = vmatprep.subr.bf16.mxu0 %v5702_v5  ;;  %v5789_v4 = vld [vmem:[#allocation7 + $0x104] ss:$24 sps:$4 sm:$0xff]   ;;  %v5784_v5 = vld [vmem:[#allocation7 + $0x6f8] ss:$24 sps:$4 sm:$0xff]  }
 0x1da   :  { %4164 = vmatprep.subr.bf16.mxu1 %v5705_v6  ;;  %v5787_v6 = vld [vmem:[#allocation7 + $0x100] ss:$24 sps:$4 sm:$0xff]  }
 0x1dc   :  { %4122 = vmatpush1.bf16.msra.mxu0 %v5700_v7  ;;  %v5792_v7 = vld [vmem:[#allocation7 + $0x6cc] ss:$24 sps:$4 sm:$0xff]  }
 0x1dd   :  { %4165 = vmatpush1.bf16.msra.mxu1 %v5703_v8  ;;  %4123 = vmatprep.subr.bf16.mxu0 %v5708_v9  ;;  %v5795_v8 = vld [vmem:[#allocation7 + $0xd4] ss:$24 sps:$4 sm:$0xff]   ;;  %v5790_v9 = vld [vmem:[#allocation7 + $0x6c8] ss:$24 sps:$4 sm:$0xff]  }
 0x1de   :  { %4166 = vmatprep.subr.bf16.mxu1 %v5711_v10  ;;  %v5793_v10 = vld [vmem:[#allocation7 + $0xd0] ss:$24 sps:$4 sm:$0xff]  }
 0x1e0   :  { %4124 = vmatpush1.bf16.msra.mxu0 %v5706_v11  ;;  %v5798_v11 = vld [vmem:[#allocation7 + $0x69c] ss:$24 sps:$4 sm:$0xff]  }
 0x1e1   :  { %4167 = vmatpush1.bf16.msra.mxu1 %v5709_v14  ;;  %4125 = vmatprep.subr.bf16.mxu0 %v5714_v15  ;;  %v5801_v14 = vld [vmem:[#allocation7 + $0xa4] ss:$24 sps:$4 sm:$0xff]   ;;  %v5796_v15 = vld [vmem:[#allocation7 + $0x698] ss:$24 sps:$4 sm:$0xff]  }
 0x1e2   :  { %4168 = vmatprep.subr.bf16.mxu1 %v5717_v16  ;;  %v5804_v16 = vld [vmem:[#allocation7 + $0x66c] ss:$24 sps:$4 sm:$0xff]  }
 0x1e4   :  { %4126 = vmatpush1.bf16.msra.mxu0 %v5712_v17  ;;  %v5807_v17 = vld [vmem:[#allocation7 + $0x74] ss:$24 sps:$4 sm:$0xff]  }
 0x1e5   :  { %4169 = vmatpush1.bf16.msra.mxu1 %v5715_v18  ;;  %4127 = vmatprep.subr.bf16.mxu0 %v5720_v19  ;;  %v5802_v18 = vld [vmem:[#allocation7 + $0x668] ss:$24 sps:$4 sm:$0xff]  }
 0x1e6   :  { %4170 = vmatprep.subr.bf16.mxu1 %v5723_v20  ;;  %v5805_v19 = vld [vmem:[#allocation7 + $0x70] ss:$24 sps:$4 sm:$0xff]   ;;  %v5810_v20 = vld [vmem:[#allocation7 + $0x63c] ss:$24 sps:$4 sm:$0xff]  }
 0x1e8   :  { %4128 = vmatpush1.bf16.msra.mxu0 %v5718_v21  ;;  %v5813_v21 = vld [vmem:[#allocation7 + $0x44] ss:$24 sps:$4 sm:$0xff]  }
 0x1e9   :  { %4171 = vmatpush1.bf16.msra.mxu1 %v5721_v22  ;;  %4129 = vmatprep.subr.bf16.mxu0 %v5726_v24  ;;  %v5808_v22 = vld [vmem:[#allocation7 + $0x638] ss:$24 sps:$4 sm:$0xff]  }
 0x1ea   :  { %4172 = vmatprep.subr.bf16.mxu1 %v5729_v25  ;;  %v5811_v24 = vld [vmem:[#allocation7 + $0x40] ss:$24 sps:$4 sm:$0xff]   ;;  %v5816_v25 = vld [vmem:[#allocation7 + $0x60c] ss:$24 sps:$4 sm:$0xff]  }
 0x1ec   :  { %4130 = vmatpush2.bf16.msra.mxu0 %v5724_v26  ;;  %v5819_v26 = vld [vmem:[#allocation7 + $0x14] ss:$24 sps:$4 sm:$0xff]  }
 0x1ed   :  { %4173 = vmatpush2.bf16.msra.mxu1 %v5727_v27  ;;  %4131 = vmatprep.subr.bf16.mxu0 %v5732_v28  ;;  %v5814_v27 = vld [vmem:[#allocation7 + $0x608] ss:$24 sps:$4 sm:$0xff]  }
 0x1ee   :  { %4174 = vmatprep.subr.bf16.mxu1 %v5735_v29  ;;  %v5817_v28 = vld [vmem:[#allocation7 + $0x10] ss:$24 sps:$4 sm:$0xff]   ;;  %v5822_v29 = vld [vmem:[#allocation7 + $0x8dc] ss:$24 sps:$4 sm:$0xff]  }
 0x1f0   :  { %4132 = vmatpush2.bf16.msra.mxu0 %v5730_v30  ;;  %v5825_v30 = vld [vmem:[#allocation7 + $0x2e4] ss:$24 sps:$4 sm:$0xff]  }
 0x1f1   :  { %4175 = vmatpush2.bf16.msra.mxu1 %v5733_v31  ;;  %4133 = vmatprep.subr.bf16.mxu0 %v5738_v32  ;;  %v5820_v31 = vld [vmem:[#allocation7 + $0x8d8] ss:$24 sps:$4 sm:$0xff]  }
 0x1f2   :  { %4176 = vmatprep.subr.bf16.mxu1 %v5741_v33  ;;  %v5823_v32 = vld [vmem:[#allocation7 + $0x2e0] ss:$24 sps:$4 sm:$0xff]   ;;  %v5828_v33 = vld [vmem:[#allocation7 + $0x8ac] ss:$24 sps:$4 sm:$0xff]  }
 0x1f4   :  { %4134 = vmatpush2.bf16.msra.mxu0 %v5736_v34  ;;  %v5831_v34 = vld [vmem:[#allocation7 + $0x2b4] ss:$24 sps:$4 sm:$0xff]  }
 0x1f5   :  { %4177 = vmatpush2.bf16.msra.mxu1 %v5739_v35  ;;  %4135 = vmatprep.subr.bf16.mxu0 %v5744_v36  ;;  %v5826_v35 = vld [vmem:[#allocation7 + $0x8a8] ss:$24 sps:$4 sm:$0xff]  }
 0x1f6   :  { %4178 = vmatprep.subr.bf16.mxu1 %v5747_v37  ;;  %v5829_v36 = vld [vmem:[#allocation7 + $0x2b0] ss:$24 sps:$4 sm:$0xff]   ;;  %v5834_v37 = vld [vmem:[#allocation7 + $0x87c] ss:$24 sps:$4 sm:$0xff]  }
 0x1f8   :  { %4136 = vmatpush2.bf16.msra.mxu0 %v5742_v38  ;;  %v5837_v38 = vld [vmem:[#allocation7 + $0x284] ss:$24 sps:$4 sm:$0xff]  }
 0x1f9   :  { %4179 = vmatpush2.bf16.msra.mxu1 %v5745_v39  ;;  %4137 = vmatprep.subr.bf16.mxu0 %v5750_v41  ;;  %v5832_v39 = vld [vmem:[#allocation7 + $0x878] ss:$24 sps:$4 sm:$0xff]  }
 0x1fa   :  { %4180 = vmatprep.subr.bf16.mxu1 %v5753_v42  ;;  %v5835_v41 = vld [vmem:[#allocation7 + $0x280] ss:$24 sps:$4 sm:$0xff]   ;;  %v5840_v42 = vld [vmem:[#allocation7 + $0x84c] ss:$24 sps:$4 sm:$0xff]  }
 0x1fc   :  { %4138 = vmatpush2.bf16.msra.mxu0 %v5748_v43  ;;  %v5843_v43 = vld [vmem:[#allocation7 + $0x254] ss:$24 sps:$4 sm:$0xff]  }
 0x1fd   :  { %4181 = vmatpush2.bf16.msra.mxu1 %v5751_v45  ;;  %4139 = vmatprep.subr.bf16.mxu0 %v5756_v46  ;;  %v5838_v45 = vld [vmem:[#allocation7 + $0x848] ss:$24 sps:$4 sm:$0xff]  }
 0x1fe   :  { %4182 = vmatprep.subr.bf16.mxu1 %v5759_v47  ;;  %v5841_v46 = vld [vmem:[#allocation7 + $0x250] ss:$24 sps:$4 sm:$0xff]   ;;  %v5846_v47 = vld [vmem:[#allocation7 + $0x81c] ss:$24 sps:$4 sm:$0xff]  }
 0x200   :  { %4140 = vmatpush2.bf16.msra.mxu0 %v5754_v12  ;;  %v5849_v12 = vld [vmem:[#allocation7 + $0x224] ss:$24 sps:$4 sm:$0xff]  }
 0x201   :  { %4183 = vmatpush2.bf16.msra.mxu1 %v5757_v13  ;;  %4141 = vmatprep.subr.bf16.mxu0 %v5762_v54  ;;  %v5844_v13 = vld [vmem:[#allocation7 + $0x818] ss:$24 sps:$4 sm:$0xff]  }
 0x202   :  { %4184 = vmatprep.subr.bf16.mxu1 %v5765_v48  ;;  %v5847_v54 = vld [vmem:[#allocation7 + $0x220] ss:$24 sps:$4 sm:$0xff]   ;;  %v5852_v48 = vld [vmem:[#allocation7 + $0x7ec] ss:$24 sps:$4 sm:$0xff]  }
 0x204   :  { %4142 = vmatpush2.bf16.msra.mxu0 %v5760_v44  ;;  %v5855_v44 = vld [vmem:[#allocation7 + $0x1f4] ss:$24 sps:$4 sm:$0xff]  }
 0x205   :  { %4185 = vmatpush2.bf16.msra.mxu1 %v5763_v51  ;;  %4143 = vmatprep.subr.bf16.mxu0 %v5768_v56  ;;  %v5850_v51 = vld [vmem:[#allocation7 + $0x7e8] ss:$24 sps:$4 sm:$0xff]  }
 0x206   :  { %4186 = vmatprep.subr.bf16.mxu1 %v5771_v23  ;;  %v5853_v56 = vld [vmem:[#allocation7 + $0x1f0] ss:$24 sps:$4 sm:$0xff]   ;;  %v5858_v23 = vld [vmem:[#allocation7 + $0x7bc] ss:$24 sps:$4 sm:$0xff]  }
 0x208   :  { %4144 = vmatpush2.bf16.msra.mxu0 %v5766_v57  ;;  %v5861_v57 = vld [vmem:[#allocation7 + $0x1c4] ss:$24 sps:$4 sm:$0xff]  }
 0x209   :  { %4187 = vmatpush2.bf16.msra.mxu1 %v5769_v58  ;;  %4199 = vmatprep.subr.bf16.mxu0 %v5774_v59  ;;  %v5856_v58 = vld [vmem:[#allocation7 + $0x7b8] ss:$24 sps:$4 sm:$0xff]  }
 0x20a   :  { %4242 = vmatprep.subr.bf16.mxu1 %v5777_v60  ;;  %v5859_v59 = vld [vmem:[#allocation7 + $0x1c0] ss:$24 sps:$4 sm:$0xff]   ;;  %v5864_v60 = vld [vmem:[#allocation7 + $0x78c] ss:$24 sps:$4 sm:$0xff]  }
 0x20b   :  { %4146 = vmatmul.mubr.bf16.vlgmr.msra.gmra.mxu0 %v6200_v53 }
 0x20c   :  { %4189 = vmatmul.mubr.bf16.vlgmr.msra.gmra.mxu1 %v6210_v52  ;;  %4200 = vmatpush1.bf16.msra.mxu0 %v5772_v61  ;;  %v5867_v61 = vld [vmem:[#allocation7 + $0x194] ss:$24 sps:$4 sm:$0xff]  }
 0x20d   :  { %4243 = vmatpush1.bf16.msra.mxu1 %v5775_v62  ;;  %4201 = vmatprep.subr.bf16.mxu0 %v5780_v63  ;;  %v5862_v62 = vld [vmem:[#allocation7 + $0x788] ss:$24 sps:$4 sm:$0xff]  }
 0x20e   :  { %4244 = vmatprep.subr.bf16.mxu1 %v5783_v0  ;;  %4231 = vmatprep.mubr.bf16.mxu0 %v6204_v50  ;;  %v5865_v63 = vld [vmem:[#allocation7 + $0x190] ss:$24 sps:$4 sm:$0xff]   ;;  %v5870_v0 = vld [vmem:[#allocation7 + $0x464] ss:$24 sps:$4 sm:$0xff]  }
 0x20f   :  { %4274 = vmatprep.mubr.bf16.mxu1 %v6194_v40  ;;  %v5799_v40 = vld [vmem:[#allocation7 + $0xa0] ss:$24 sps:$4 sm:$0xff]  }
 0x210   :  { %4202 = vmatpush1.bf16.msra.mxu0 %v5778_v1  ;;  %v5873_v1 = vld [vmem:[#allocation7 + $0x764] ss:$24 sps:$4 sm:$0xff]  }
 0x211   :  { %4245 = vmatpush1.bf16.msra.mxu1 %v5781_v2  ;;  %4203 = vmatprep.subr.bf16.mxu0 %v5786_v3  ;;  %v5868_v2 = vld [vmem:[#allocation7 + $0x460] ss:$24 sps:$4 sm:$0xff]  }
 0x212   :  { %4246 = vmatprep.subr.bf16.mxu1 %v5789_v4  ;;  %v5871_v3 = vld [vmem:[#allocation7 + $0x760] ss:$24 sps:$4 sm:$0xff]   ;;  %v5876_v4 = vld [vmem:[#allocation7 + $0x434] ss:$24 sps:$4 sm:$0xff]  }
 0x214   :  { %4204 = vmatpush1.bf16.msra.mxu0 %v5784_v5  ;;  %v5879_v5 = vld [vmem:[#allocation7 + $0x734] ss:$24 sps:$4 sm:$0xff]  }
 0x215   :  { %4247 = vmatpush1.bf16.msra.mxu1 %v5787_v6  ;;  %4205 = vmatprep.subr.bf16.mxu0 %v5792_v7  ;;  %v5874_v6 = vld [vmem:[#allocation7 + $0x430] ss:$24 sps:$4 sm:$0xff]  }
 0x216   :  { %4248 = vmatprep.subr.bf16.mxu1 %v5795_v8  ;;  %v5877_v7 = vld [vmem:[#allocation7 + $0x730] ss:$24 sps:$4 sm:$0xff]   ;;  %v5882_v8 = vld [vmem:[#allocation7 + $0x404] ss:$24 sps:$4 sm:$0xff]  }
 0x218   :  { %4206 = vmatpush1.bf16.msra.mxu0 %v5790_v9  ;;  %v5885_v9 = vld [vmem:[#allocation7 + $0x704] ss:$24 sps:$4 sm:$0xff]  }
 0x219   :  { %4249 = vmatpush1.bf16.msra.mxu1 %v5793_v10  ;;  %4207 = vmatprep.subr.bf16.mxu0 %v5798_v11  ;;  %v5880_v10 = vld [vmem:[#allocation7 + $0x400] ss:$24 sps:$4 sm:$0xff]  }
 0x21a   :  { %4250 = vmatprep.subr.bf16.mxu1 %v5801_v14  ;;  %v5883_v11 = vld [vmem:[#allocation7 + $0x700] ss:$24 sps:$4 sm:$0xff]   ;;  %v5888_v14 = vld [vmem:[#allocation7 + $0x3d4] ss:$24 sps:$4 sm:$0xff]  }
 0x21c   :  { %4208 = vmatpush1.bf16.msra.mxu0 %v5796_v15  ;;  %v5886_v15 = vld [vmem:[#allocation7 + $0x3d0] ss:$24 sps:$4 sm:$0xff]  }
 0x21d   :  { %4251 = vmatpush1.bf16.msra.mxu1 %v5799_v40  ;;  %4209 = vmatprep.subr.bf16.mxu0 %v5804_v16  ;;  %v5889_v40 = vld [vmem:[#allocation7 + $0x6d0] ss:$24 sps:$4 sm:$0xff]   ;;  %v5894_v16 = vld [vmem:[#allocation7 + $0x3a4] ss:$24 sps:$4 sm:$0xff]  }
 0x21e   :  { %4252 = vmatprep.subr.bf16.mxu1 %v5807_v17  ;;  %v5897_v17 = vld [vmem:[#allocation7 + $0x6a4] ss:$24 sps:$4 sm:$0xff]  }
 0x220   :  { %4210 = vmatpush1.bf16.msra.mxu0 %v5802_v18  ;;  %v5900_v18 = vld [vmem:[#allocation7 + $0x374] ss:$24 sps:$4 sm:$0xff]  }
 0x221   :  { %4253 = vmatpush1.bf16.msra.mxu1 %v5805_v19  ;;  %4211 = vmatprep.subr.bf16.mxu0 %v5810_v20  ;;  %v5903_v19 = vld [vmem:[#allocation7 + $0x674] ss:$24 sps:$4 sm:$0xff]   ;;  %v5898_v20 = vld [vmem:[#allocation7 + $0x370] ss:$24 sps:$4 sm:$0xff]  }
 0x222   :  { %4254 = vmatprep.subr.bf16.mxu1 %v5813_v21  ;;  %v5901_v21 = vld [vmem:[#allocation7 + $0x670] ss:$24 sps:$4 sm:$0xff]  }
 0x224   :  { %4212 = vmatpush1.bf16.msra.mxu0 %v5808_v22  ;;  %v5906_v22 = vld [vmem:[#allocation7 + $0x344] ss:$24 sps:$4 sm:$0xff]  }
 0x225   :  { %4255 = vmatpush1.bf16.msra.mxu1 %v5811_v24  ;;  %4213 = vmatprep.subr.bf16.mxu0 %v5816_v25  ;;  %v5909_v24 = vld [vmem:[#allocation7 + $0x644] ss:$24 sps:$4 sm:$0xff]   ;;  %v5904_v25 = vld [vmem:[#allocation7 + $0x340] ss:$24 sps:$4 sm:$0xff]  }
 0x226   :  { %4256 = vmatprep.subr.bf16.mxu1 %v5819_v26  ;;  %v5907_v26 = vld [vmem:[#allocation7 + $0x640] ss:$24 sps:$4 sm:$0xff]  }
 0x228   :  { %4214 = vmatpush1.bf16.msra.mxu0 %v5814_v27  ;;  %v5912_v27 = vld [vmem:[#allocation7 + $0x314] ss:$24 sps:$4 sm:$0xff]  }
 0x229   :  { %4257 = vmatpush1.bf16.msra.mxu1 %v5817_v28  ;;  %4215 = vmatprep.subr.bf16.mxu0 %v5822_v29  ;;  %v5915_v28 = vld [vmem:[#allocation7 + $0x614] ss:$24 sps:$4 sm:$0xff]   ;;  %v5910_v29 = vld [vmem:[#allocation7 + $0x310] ss:$24 sps:$4 sm:$0xff]  }
 0x22a   :  { %4258 = vmatprep.subr.bf16.mxu1 %v5825_v30  ;;  %v5913_v30 = vld [vmem:[#allocation7 + $0x610] ss:$24 sps:$4 sm:$0xff]  }
 0x22c   :  { %4216 = vmatpush2.bf16.msra.mxu0 %v5820_v31  ;;  %v5918_v31 = vld [vmem:[#allocation7 + $0x5e4] ss:$24 sps:$4 sm:$0xff]  }
 0x22d   :  { %4259 = vmatpush2.bf16.msra.mxu1 %v5823_v32  ;;  %4217 = vmatprep.subr.bf16.mxu0 %v5828_v33  ;;  %v5921_v32 = vld [vmem:[#allocation7 + $0x8e4] ss:$24 sps:$4 sm:$0xff]   ;;  %v5916_v33 = vld [vmem:[#allocation7 + $0x5e0] ss:$24 sps:$4 sm:$0xff]  }
 0x22e   :  { %4260 = vmatprep.subr.bf16.mxu1 %v5831_v34  ;;  %v5919_v34 = vld [vmem:[#allocation7 + $0x8e0] ss:$24 sps:$4 sm:$0xff]  }
 0x230   :  { %4218 = vmatpush2.bf16.msra.mxu0 %v5826_v35  ;;  %v5924_v35 = vld [vmem:[#allocation7 + $0x5b4] ss:$24 sps:$4 sm:$0xff]  }
 0x231   :  { %4261 = vmatpush2.bf16.msra.mxu1 %v5829_v36  ;;  %4219 = vmatprep.subr.bf16.mxu0 %v5834_v37  ;;  %v5927_v36 = vld [vmem:[#allocation7 + $0x8b4] ss:$24 sps:$4 sm:$0xff]   ;;  %v5922_v37 = vld [vmem:[#allocation7 + $0x5b0] ss:$24 sps:$4 sm:$0xff]  }
 0x232   :  { %4262 = vmatprep.subr.bf16.mxu1 %v5837_v38  ;;  %v5925_v38 = vld [vmem:[#allocation7 + $0x8b0] ss:$24 sps:$4 sm:$0xff]  }
 0x234   :  { %4220 = vmatpush2.bf16.msra.mxu0 %v5832_v39  ;;  %v5930_v39 = vld [vmem:[#allocation7 + $0x584] ss:$24 sps:$4 sm:$0xff]  }
 0x235   :  { %4263 = vmatpush2.bf16.msra.mxu1 %v5835_v41  ;;  %4221 = vmatprep.subr.bf16.mxu0 %v5840_v42  ;;  %v5933_v41 = vld [vmem:[#allocation7 + $0x884] ss:$24 sps:$4 sm:$0xff]   ;;  %v5928_v42 = vld [vmem:[#allocation7 + $0x580] ss:$24 sps:$4 sm:$0xff]  }
 0x236   :  { %4264 = vmatprep.subr.bf16.mxu1 %v5843_v43  ;;  %v5931_v43 = vld [vmem:[#allocation7 + $0x880] ss:$24 sps:$4 sm:$0xff]  }
 0x238   :  { %4222 = vmatpush2.bf16.msra.mxu0 %v5838_v45  ;;  %v5936_v45 = vld [vmem:[#allocation7 + $0x554] ss:$24 sps:$4 sm:$0xff]  }
 0x239   :  { %4265 = vmatpush2.bf16.msra.mxu1 %v5841_v46  ;;  %4223 = vmatprep.subr.bf16.mxu0 %v5846_v47  ;;  %v5939_v46 = vld [vmem:[#allocation7 + $0x854] ss:$24 sps:$4 sm:$0xff]   ;;  %v5934_v47 = vld [vmem:[#allocation7 + $0x550] ss:$24 sps:$4 sm:$0xff]  }
 0x23a   :  { %4266 = vmatprep.subr.bf16.mxu1 %v5849_v12  ;;  %v5937_v12 = vld [vmem:[#allocation7 + $0x850] ss:$24 sps:$4 sm:$0xff]  }
 0x23c   :  { %4224 = vmatpush2.bf16.msra.mxu0 %v5844_v13  ;;  %v5942_v13 = vld [vmem:[#allocation7 + $0x524] ss:$24 sps:$4 sm:$0xff]  }
 0x23d   :  { %4267 = vmatpush2.bf16.msra.mxu1 %v5847_v54  ;;  %4225 = vmatprep.subr.bf16.mxu0 %v5852_v48  ;;  %v5945_v54 = vld [vmem:[#allocation7 + $0x824] ss:$24 sps:$4 sm:$0xff]   ;;  %v5940_v48 = vld [vmem:[#allocation7 + $0x520] ss:$24 sps:$4 sm:$0xff]  }
 0x23e   :  { %4268 = vmatprep.subr.bf16.mxu1 %v5855_v44  ;;  %v5943_v44 = vld [vmem:[#allocation7 + $0x820] ss:$24 sps:$4 sm:$0xff]  }
 0x240   :  { %4226 = vmatpush2.bf16.msra.mxu0 %v5850_v51  ;;  %v5948_v51 = vld [vmem:[#allocation7 + $0x4f4] ss:$24 sps:$4 sm:$0xff]  }
 0x241   :  { %4269 = vmatpush2.bf16.msra.mxu1 %v5853_v56  ;;  %4227 = vmatprep.subr.bf16.mxu0 %v5858_v23  ;;  %v5951_v56 = vld [vmem:[#allocation7 + $0x7f4] ss:$24 sps:$4 sm:$0xff]   ;;  %v5946_v23 = vld [vmem:[#allocation7 + $0x4f0] ss:$24 sps:$4 sm:$0xff]  }
 0x242   :  { %4270 = vmatprep.subr.bf16.mxu1 %v5861_v57  ;;  %v5949_v57 = vld [vmem:[#allocation7 + $0x7f0] ss:$24 sps:$4 sm:$0xff]  }
 0x244   :  { %4228 = vmatpush2.bf16.msra.mxu0 %v5856_v58  ;;  %v5954_v58 = vld [vmem:[#allocation7 + $0x4c4] ss:$24 sps:$4 sm:$0xff]  }
 0x245   :  { %4271 = vmatpush2.bf16.msra.mxu1 %v5859_v59  ;;  %4229 = vmatprep.subr.bf16.mxu0 %v5864_v60  ;;  %v5957_v59 = vld [vmem:[#allocation7 + $0x7c4] ss:$24 sps:$4 sm:$0xff]   ;;  %v5952_v60 = vld [vmem:[#allocation7 + $0x4c0] ss:$24 sps:$4 sm:$0xff]  }
 0x246   :  { %4272 = vmatprep.subr.bf16.mxu1 %v5867_v61  ;;  %v5955_v61 = vld [vmem:[#allocation7 + $0x7c0] ss:$24 sps:$4 sm:$0xff]  }
 0x248   :  { %4230 = vmatpush2.bf16.msra.mxu0 %v5862_v62  ;;  %v5960_v62 = vld [vmem:[#allocation7 + $0x494] ss:$24 sps:$4 sm:$0xff]  }
 0x249   :  { %4273 = vmatpush2.bf16.msra.mxu1 %v5865_v63  ;;  %4285 = vmatprep.subr.bf16.mxu0 %v5870_v0  ;;  %v5963_v63 = vld [vmem:[#allocation7 + $0x794] ss:$24 sps:$4 sm:$0xff]   ;;  %v5958_v0 = vld [vmem:[#allocation7 + $0x490] ss:$24 sps:$4 sm:$0xff]  }
 0x24a   :  { %4328 = vmatprep.subr.bf16.mxu1 %v5873_v1  ;;  %v5961_v1 = vld [vmem:[#allocation7 + $0x790] ss:$24 sps:$4 sm:$0xff]  }
 0x24b   :  { %4232 = vmatmul.mubr.bf16.vlgmr.msra.gmra.mxu0 %v6212_v55 }
 0x24c   :  { %4275 = vmatmul.mubr.bf16.vlgmr.msra.gmra.mxu1 %v6200_v53  ;;  %4286 = vmatpush1.bf16.msra.mxu0 %v5868_v2  ;;  %v5891_v53 = vld [vmem:[#allocation7 + $0x6d4] ss:$24 sps:$4 sm:$0xff]   ;;  %v2191_v2 = vpop.f32.mrf.mxu0 }
 0x24d   :  { %4329 = vmatpush1.bf16.msra.mxu1 %v5871_v3  ;;  %4287 = vmatprep.subr.bf16.mxu0 %v5876_v4  ;;  %v2234_v4 = vpop.f32.mrf.mxu1 }
 0x24e   :  { %4330 = vmatprep.subr.bf16.mxu1 %v5879_v5  ;;  %4317 = vmatprep.mubr.bf16.mxu0 %v6202_v49  ;;  %v5892_v49 = vld [vmem:[#allocation7 + $0x3a0] ss:$24 sps:$4 sm:$0xff]   ;;  %v2193_v3 = vpop.f32.mrf.mxu0 }
 0x24f   :  { %4360 = vmatprep.mubr.bf16.mxu1 %v6204_v50  ;;  %v5895_v50 = vld [vmem:[#allocation7 + $0x6a0] ss:$24 sps:$4 sm:$0xff]  }
 0x250   :  { %4288 = vmatpush1.bf16.msra.mxu0 %v5874_v6  ;;  %v2195_v5 = vpop.f32.mrf.mxu0  ;;  %v2236_v6 = vpop.f32.mrf.mxu1 }
 0x251   :  { %4331 = vmatpush1.bf16.msra.mxu1 %v5877_v7  ;;  %4289 = vmatprep.subr.bf16.mxu0 %v5882_v8 }
 0x252   :  { %4332 = vmatprep.subr.bf16.mxu1 %v5885_v9  ;;  %v2197_v7 = vpop.f32.mrf.mxu0  ;;  %v2238_v8 = vpop.f32.mrf.mxu1 }
 0x254   :  { %4290 = vmatpush1.bf16.msra.mxu0 %v5880_v10  ;;  %v2277_v9 = vpop.f32.mrf.mxu0  ;;  %v2240_v10 = vpop.f32.mrf.mxu1 }
 0x255   :  { %4333 = vmatpush1.bf16.msra.mxu1 %v5883_v11  ;;  %4291 = vmatprep.subr.bf16.mxu0 %v5888_v14 }
 0x256   :  { %4334 = vmatprep.subr.bf16.mxu1 %v5891_v53  ;;  %v2279_v11 = vpop.f32.mrf.mxu0  ;;  %v2320_v14 = vpop.f32.mrf.mxu1 }
 0x258   :  { %4292 = vmatpush1.bf16.msra.mxu0 %v5886_v15  ;;  %v2281_v53 = vpop.f32.mrf.mxu0  ;;  %v2322_v15 = vpop.f32.mrf.mxu1 }
 0x259   :  { %4335 = vmatpush1.bf16.msra.mxu1 %v5889_v40  ;;  %4293 = vmatprep.subr.bf16.mxu0 %v5894_v16 }
 0x25a   :  { %4336 = vmatprep.subr.bf16.mxu1 %v5897_v17  ;;  %v2283_v40 = vpop.f32.mrf.mxu0  ;;  %v2324_v16 = vpop.f32.mrf.mxu1 }
 0x25c   :  { %4294 = vmatpush1.bf16.msra.mxu0 %v5892_v49  ;;  %v2363_v17 = vpop.f32.mrf.mxu0  ;;  %v6228_v49 = vpop.f32.mrf.mxu1 }
 0x25d   :  { %4337 = vmatpush1.bf16.msra.mxu1 %v5895_v50  ;;  %4295 = vmatprep.subr.bf16.mxu0 %v5900_v18 }
 0x25e   :  { %4338 = vmatprep.subr.bf16.mxu1 %v5903_v19 }
 0x260   :  { %4296 = vmatpush1.bf16.msra.mxu0 %v5898_v20 }
 0x261   :  { %4339 = vmatpush1.bf16.msra.mxu1 %v5901_v21  ;;  %4297 = vmatprep.subr.bf16.mxu0 %v5906_v22 }
 0x262   :  { %4340 = vmatprep.subr.bf16.mxu1 %v5909_v24 }
 0x264   :  { %4298 = vmatpush1.bf16.msra.mxu0 %v5904_v25 }
 0x265   :  { %4341 = vmatpush1.bf16.msra.mxu1 %v5907_v26  ;;  %4299 = vmatprep.subr.bf16.mxu0 %v5912_v27 }
 0x266   :  { %4342 = vmatprep.subr.bf16.mxu1 %v5915_v28 }
 0x268   :  { %4300 = vmatpush1.bf16.msra.mxu0 %v5910_v29 }
 0x269   :  { %4343 = vmatpush1.bf16.msra.mxu1 %v5913_v30  ;;  %4301 = vmatprep.subr.bf16.mxu0 %v5918_v31 }
 0x26a   :  { %4344 = vmatprep.subr.bf16.mxu1 %v5921_v32 }
 0x26c   :  { %4302 = vmatpush2.bf16.msra.mxu0 %v5916_v33 }
 0x26d   :  { %4345 = vmatpush2.bf16.msra.mxu1 %v5919_v34  ;;  %4303 = vmatprep.subr.bf16.mxu0 %v5924_v35 }
 0x26e   :  { %4346 = vmatprep.subr.bf16.mxu1 %v5927_v36 }
 0x270   :  { %4304 = vmatpush2.bf16.msra.mxu0 %v5922_v37 }
 0x271   :  { %4347 = vmatpush2.bf16.msra.mxu1 %v5925_v38  ;;  %4305 = vmatprep.subr.bf16.mxu0 %v5930_v39 }
 0x272   :  { %4348 = vmatprep.subr.bf16.mxu1 %v5933_v41 }
 0x274   :  { %4306 = vmatpush2.bf16.msra.mxu0 %v5928_v42 }
 0x275   :  { %4349 = vmatpush2.bf16.msra.mxu1 %v5931_v43  ;;  %4307 = vmatprep.subr.bf16.mxu0 %v5936_v45 }
 0x276   :  { %4350 = vmatprep.subr.bf16.mxu1 %v5939_v46 }
 0x278   :  { %4308 = vmatpush2.bf16.msra.mxu0 %v5934_v47 }
 0x279   :  { %4351 = vmatpush2.bf16.msra.mxu1 %v5937_v12  ;;  %4309 = vmatprep.subr.bf16.mxu0 %v5942_v13 }
 0x27a   :  { %4352 = vmatprep.subr.bf16.mxu1 %v5945_v54 }
 0x27c   :  { %4310 = vmatpush2.bf16.msra.mxu0 %v5940_v48 }
 0x27d   :  { %4353 = vmatpush2.bf16.msra.mxu1 %v5943_v44  ;;  %4311 = vmatprep.subr.bf16.mxu0 %v5948_v51  ;;  %v2237_v44 = vadd.f32 %v2236_v6, %v2193_v3  ;;  %v4373_v51 = vlaneseq }
 0x27e   :  { %4354 = vmatprep.subr.bf16.mxu1 %v5951_v56 }
 0x280   :  { %4312 = vmatpush2.bf16.msra.mxu0 %v5946_v23  ;;  %v2364_v23 = vadd.f32 %v2363_v17, %v2320_v14 }
 0x281   :  { %4355 = vmatpush2.bf16.msra.mxu1 %v5949_v57  ;;  %4313 = vmatprep.subr.bf16.mxu0 %v5954_v58  ;;  %v2235_v58 = vadd.f32 %v2234_v4, %v2191_v2 }
 0x282   :  { %4356 = vmatprep.subr.bf16.mxu1 %v5957_v59  ;;  %v2280_v59 = vadd.f32 %v2279_v11, %v2237_v44 }
 0x284   :  { %4314 = vmatpush2.bf16.msra.mxu0 %v5952_v60  ;;  %v2239_v60 = vadd.f32 %v2238_v8, %v2195_v5 }
 0x285   :  { %4357 = vmatpush2.bf16.msra.mxu1 %v5955_v61  ;;  %4315 = vmatprep.subr.bf16.mxu0 %v5960_v62  ;;  %v2278_v61 = vadd.f32 %v2277_v9, %v2235_v58 }
 0x286   :  { %4358 = vmatprep.subr.bf16.mxu1 %v5963_v63 }
 0x288   :  { %4316 = vmatpush2.bf16.msra.mxu0 %v5958_v0  ;;  %v6256_v0 = vshrl.u32 %v4373_v51, 7 }
 0x289   :  { %4359 = vmatpush2.bf16.msra.mxu1 %v5961_v1 }
 0x28a   :  { %v4379_v6 = vsub.s32 1, %v6256_v0  ;;  %v4375_v9 = vsub.s32 0, %v6256_v0 }
 0x28b   :  { %4318 = vmatmul.mubr.bf16.vlgmr.msra.gmra.mxu0 %v6210_v52  ;;  %v2365_v52 = vpop.f32.mrf.mxu0 }
 0x28c   :  { %4361 = vmatmul.mubr.bf16.vlgmr.msra.gmra.mxu1 %v6212_v55  ;;  %v2406_v55 = vpop.f32.mrf.mxu1  ;;  %v2366_v62 = vadd.f32 %v2365_v52, %v2322_v15 }
 0x28d   :  { %v2367_v50 = vpop.f32.mrf.mxu0 }
 0x28e   :  { %v2408_v18 = vpop.f32.mrf.mxu1 }
 0x28f   :  { %v2369_v19 = vpop.f32.mrf.mxu0  ;;  %v2409_v4 = vadd.f32 %v2408_v18, %v2366_v62 }
 0x290   :  { %v2410_v20 = vpop.f32.mrf.mxu1  ;;  %v2370_v15 = vadd.f32 %v2369_v19, %v6228_v49 }
 0x291   :  { %v6230_v21 = vpop.f32.mrf.mxu0 }
 0x292   :  { %v6232_v22 = vpop.f32.mrf.mxu1 }
 0x293   :  { %v6234_v24 = vpop.f32.mrf.mxu0  ;;  %v2413_v49 = vadd.f32 %v6232_v22, %v2370_v15 }
 0x294   :  { %v6236_v25 = vpop.f32.mrf.mxu1 }
 0x295   :  { %v6238_v26 = vpop.f32.mrf.mxu0 }
 0x296   :  { %v6240_v27 = vpop.f32.mrf.mxu1 }
 0x297   :  { %v6242_v28 = vpop.f32.mrf.mxu0 }
 0x298   :  { %6311 = vst [vmem:[#allocation17_spill] sm:$0xff] %v6242_v28  ;;  %v6244_v29 = vpop.f32.mrf.mxu1 }
 0x299   :  { %v6246_v30 = vpop.f32.mrf.mxu0 }
 0x29a   :  { %6312 = vst [vmem:[#allocation18_spill] sm:$0xff] %v6246_v30  ;;  %v6248_v31 = vpop.f32.mrf.mxu1 }
 0x29b   :  { %6313 = vst [vmem:[#allocation19_spill] sm:$0xff] %v6248_v31  ;;  %v6250_v32 = vpop.f32.mrf.mxu0  ;;  %v2282_v31 = vadd.f32 %v2281_v53, %v2239_v60  ;;  %v4383_v53 = vsub.s32 2, %v6256_v0 }
 0x29c   :  { %6314 = vst [vmem:[#allocation20_spill] sm:$0xff] %v6250_v32  ;;  %v4018_v33 = vpop.f32.mrf.mxu1  ;;  %v2368_v32 = vadd.f32 %v2367_v50, %v2324_v16 }
 0x29d   :  { %v6252_v34 = vpop.f32.mrf.mxu0  ;;  %v4019_v28 = vadd.f32 %v4018_v33, %v2278_v61  ;;  %v2497_v61 = vadd.f32 %v6244_v29, %v6238_v26 }
 0x29e   :  { %6315 = vst [vmem:[#allocation21_spill] sm:$0xff] %v6252_v34  ;;  %v4020_v35 = vpop.f32.mrf.mxu1  ;;  %v2407_v34 = vadd.f32 %v2406_v55, %v2364_v23  ;;  %v2411_v11 = vadd.f32 %v2410_v20, %v2368_v32 }
 0x29f   :  { %v6254_v36 = vpop.f32.mrf.mxu0  ;;  %v4021_v63 = vadd.f32 %v4020_v35, %v2280_v59 }
 0x2a0   :  { %6316 = vst [vmem:[#allocation22_spill] sm:$0xff] %v6254_v36  ;;  %v4022_v37 = vpop.f32.mrf.mxu1  ;;  %v2241_v36 = vadd.f32 %v2240_v10, %v2197_v7  ;;  %v6261_v10 = vld [vmem:[#allocation10] sm:$0x3f] }
 0x2a1   :  { %v4061_v38 = vpop.f32.mrf.mxu0  ;;  %v4023_v5 = vadd.f32 %v4022_v37, %v2282_v31  ;;  %v4380_v55 = vrot.slane %v6261_v10, %v4379_v6  ;;  %v4376_v20 = vrot.slane %v6261_v10, %v4375_v9  ;;  %v4384_v32 = vrot.slane %v6261_v10, %v4383_v53 }
 0x2a2   :  { %v4024_v39 = vpop.f32.mrf.mxu1  ;;  %v2284_v17 = vadd.f32 %v2283_v40, %v2241_v36  ;;  %v4062_v8 = vadd.f32 %v4061_v38, %v4019_v28  ;;  %v4387_v36 = vsub.s32 3, %v6256_v0 }
 0x2a3   :  { %v4063_v41 = vpop.f32.mrf.mxu0 }
 0x2a4   :  { %v4104_v42 = vpop.f32.mrf.mxu1  ;;  %v4064_v3 = vadd.f32 %v4063_v41, %v4021_v63  ;;  %v4025_v7 = vadd.f32 %v4024_v39, %v2284_v17  ;;  %v4388_v22 = vrot.slane %v6261_v10, %v4387_v36  ;;  %v6319_v17 = vld [vmem:[#allocation18_spill] sm:$0xff] }
 0x2a5   :  { %v4065_v43 = vpop.f32.mrf.mxu0  ;;  %v4105_v35 = vadd.f32 %v4104_v42, %v4062_v8  ;;  %v4391_v8 = vsub.s32 4, %v6256_v0 }
 0x2a6   :  { %v4106_v45 = vpop.f32.mrf.mxu1  ;;  %v4066_v50 = vadd.f32 %v4065_v43, %v4023_v5 }
 0x2a7   :  { %v4067_v46 = vpop.f32.mrf.mxu0  ;;  %v4107_v52 = vadd.f32 %v4106_v45, %v4064_v3 }
 0x2a8   :  { %v4108_v47 = vpop.f32.mrf.mxu1  ;;  %v4068_v33 = vadd.f32 %v4067_v46, %v4025_v7  ;;  %v6321_v7 = vld [vmem:[#allocation21_spill] sm:$0xff] }
 0x2a9   :  { %v4404_v37 = vadd.f32 %v4380_v55, %v4107_v52  ;;  %v4109_v38 = vadd.f32 %v4108_v47, %v4066_v50  ;;  %v2495_v47 = vadd.f32 %v6240_v27, %v6234_v24  ;;  %v6317_v27 = vld [vmem:[#allocation17_spill] sm:$0xff] }
 0x2aa   :  { %v4110_v13 = vpop.f32.mrf.mxu1 }
 0x2ab   :  { %v4111_v41 = vadd.f32 %v4110_v13, %v4068_v33 }
 0x2ad   :  { %v4410_v58 = vadd.f32 %v4380_v55, %v4111_v41 }
 0x2af   :  { %v4422_v29 = vmax.f32 %v4410_v58, 0.0 }
 0x2cb   :  { %v4147_v12 = vpop.f32.mrf.mxu0 }
 0x2cc   :  { %v4190_v48 = vpop.f32.mrf.mxu1  ;;  %v4148_v2 = vadd.f32 %v4147_v12, %v2407_v34 }
 0x2cd   :  { %v4149_v54 = vpop.f32.mrf.mxu0 }
 0x2ce   :  { %v4192_v57 = vpop.f32.mrf.mxu1  ;;  %v4191_v18 = vadd.f32 %v4190_v48, %v4148_v2  ;;  %v4150_v31 = vadd.f32 %v4149_v54, %v2409_v4  ;;  %v4403_v54 = vadd.f32 %v4376_v20, %v4105_v35  ;;  %v6269_v48 = vld [vmem:[#allocation11] sm:$0x3f]  ;;  %v6322_v35 = vld [vmem:[#allocation22_spill] sm:$0xff] }
 0x2cf   :  { %v4151_v56 = vpop.f32.mrf.mxu0  ;;  %v4436_v13 = vrot.slane %v6269_v48, %v4379_v6  ;;  %v4432_v63 = vrot.slane %v6269_v48, %v4375_v9  ;;  %v6318_v6 = vld [vmem:[#allocation19_spill] sm:$0xff]  ;;  %v6320_v4 = vld [vmem:[#allocation20_spill] sm:$0xff]  ;;  %v4395_v9 = vsub.s32 5, %v6256_v0  ;;  %v4444_v55 = vrot.slane %v6269_v48, %v4387_v36 }
 0x2d0   :  { %v4194_v30 = vpop.f32.mrf.mxu1  ;;  %v4152_v28 = vadd.f32 %v4151_v56, %v2411_v11  ;;  %v4193_v43 = vadd.f32 %v4192_v57, %v4150_v31  ;;  %v2493_v56 = vadd.f32 %v6236_v25, %v6230_v21  ;;  %v4409_v57 = vadd.f32 %v4376_v20, %v4109_v38 }
 0x2d1   :  { %v4153_v1 = vpop.f32.mrf.mxu0  ;;  %v4415_v62 = vmax.f32 %v4403_v54, 0.0  ;;  %v2538_v5 = vadd.f32 %v6320_v4, %v2495_v47  ;;  %v4466_v38 = vmul.f32 %v4436_v13, %v4422_v29  ;;  %v4452_v58 = vrot.slane %v6269_v48, %v4395_v9 }
 0x2d2   :  { %v4196_v16 = vpop.f32.mrf.mxu1  ;;  %v4195_v45 = vadd.f32 %v4194_v30, %v4152_v28  ;;  %v4154_v46 = vadd.f32 %v4153_v1, %v2413_v49  ;;  %v4416_v30 = vmax.f32 %v4404_v37, 0.0  ;;  %v4440_v1 = vrot.slane %v6269_v48, %v4383_v53 }
 0x2d3   :  { %v2536_v2 = vadd.f32 %v6319_v17, %v2493_v56  ;;  %v4421_v26 = vmax.f32 %v4409_v57, 0.0  ;;  %v4459_v53 = vmul.f32 %v4432_v63, %v4415_v62 }
 0x2d4   :  { %v4197_v59 = vadd.f32 %v4196_v16, %v4154_v46  ;;  %v4460_v11 = vmul.f32 %v4436_v13, %v4416_v30  ;;  %v2540_v16 = vadd.f32 %v6321_v7, %v2497_v61  ;;  %v4448_v46 = vrot.slane %v6269_v48, %v4391_v8 }
 0x2d5   :  { %v4465_v0 = vmul.f32 %v4432_v63, %v4421_v26 }
 0x2d6   :  { %v4471_v37 = vadd.f32 %v4460_v11, %v4459_v53 }
 0x2d7   :  { %v4478_v13 = vadd.f32 %v4466_v38, %v4465_v0 }
 0x30b   :  { %v4233_v14 = vpop.f32.mrf.mxu0 }
 0x30c   :  { %v4276_v34 = vpop.f32.mrf.mxu1  ;;  %v4234_v19 = vadd.f32 %v4233_v14, %v4191_v18  ;;  %v2499_v14 = vadd.f32 %v6318_v6, %v6317_v27 }
 0x30d   :  { %v4235_v40 = vpop.f32.mrf.mxu0  ;;  %v4277_v52 = vadd.f32 %v4276_v34, %v2536_v2  ;;  %v4396_v34 = vrot.slane %v6261_v10, %v4395_v9 }
 0x30e   :  { %v4278_v12 = vpop.f32.mrf.mxu1  ;;  %v4405_v42 = vadd.f32 %v4384_v32, %v4234_v19  ;;  %v4236_v44 = vadd.f32 %v4235_v40, %v4193_v43  ;;  %v2542_v20 = vadd.f32 %v6322_v35, %v2499_v14 }
 0x30f   :  { %v4237_v39 = vpop.f32.mrf.mxu0  ;;  %v4279_v49 = vadd.f32 %v4278_v12, %v2538_v5 }
 0x310   :  { %v4238_v51 = vadd.f32 %v4237_v39, %v4195_v45  ;;  %v4280_v60 = vpop.f32.mrf.mxu1  ;;  %v4417_v21 = vmax.f32 %v4405_v42, 0.0  ;;  %v4406_v25 = vadd.f32 %v4388_v22, %v4236_v44 }
 0x311   :  { %v4239_v23 = vpop.f32.mrf.mxu0  ;;  %v4281_v36 = vadd.f32 %v4280_v60, %v2540_v16 }
 0x312   :  { %v4411_v3 = vadd.f32 %v4384_v32, %v4238_v51  ;;  %v4240_v24 = vadd.f32 %v4239_v23, %v4197_v59  ;;  %v4282_v15 = vpop.f32.mrf.mxu1  ;;  %v4461_v50 = vmul.f32 %v4440_v1, %v4417_v21  ;;  %v4418_v40 = vmax.f32 %v4406_v25, 0.0 }
 0x313   :  { %v4392_v32 = vrot.slane %v6261_v10, %v4391_v8  ;;  %v4283_v56 = vadd.f32 %v4282_v15, %v2542_v20  ;;  %v4486_v15 = vstv %s6309_s6 }
 0x314   :  { %v4423_v33 = vmax.f32 %v4411_v3, 0.0  ;;  %v4412_v18 = vadd.f32 %v4388_v22, %v4240_v24  ;;  %v4462_v54 = vmul.f32 %v4444_v55, %v4418_v40  ;;  %v4472_v51 = vadd.f32 %v4471_v37, %v4461_v50 }
 0x316   :  { %v4467_v42 = vmul.f32 %v4440_v1, %v4423_v33  ;;  %v4424_v44 = vmax.f32 %v4412_v18, 0.0  ;;  %v4473_v1 = vadd.f32 %v4472_v51, %v4462_v54 }
 0x318   :  { %v4479_v62 = vadd.f32 %v4478_v13, %v4467_v42  ;;  %v4468_v63 = vmul.f32 %v4444_v55, %v4424_v44 }
 0x31a   :  { %v4480_v48 = vadd.f32 %v4479_v62, %v4468_v63 }
 0x34b   :  { %v4319_v31 = vpop.f32.mrf.mxu0 }
 0x34c   :  { %v4362_v28 = vpop.f32.mrf.mxu1  ;;  %v4320_v19 = vadd.f32 %v4319_v31, %v4277_v52 }
 0x34d   :  { %v4321_v39 = vpop.f32.mrf.mxu0 }
 0x34e   :  { %v4364_v41 = vpop.f32.mrf.mxu1  ;;  %v4363_v43 = vadd.f32 %v4362_v28, %v4320_v19  ;;  %v4322_v45 = vadd.f32 %v4321_v39, %v4279_v49 }
 0x34f   :  { %v4323_v22 = vpop.f32.mrf.mxu0 }
 0x350   :  { %v4366_v12 = vpop.f32.mrf.mxu1  ;;  %v4407_v47 = vadd.f32 %v4392_v32, %v4363_v43  ;;  %v4365_v23 = vadd.f32 %v4364_v41, %v4322_v45  ;;  %v4324_v30 = vadd.f32 %v4323_v22, %v4281_v36 }
 0x351   :  { %v4325_v57 = vpop.f32.mrf.mxu0 }
 0x352   :  { %v4419_v10 = vmax.f32 %v4407_v47, 0.0  ;;  %v4408_v59 = vadd.f32 %v4396_v34, %v4365_v23  ;;  %v4367_v60 = vadd.f32 %v4366_v12, %v4324_v30  ;;  %v4326_v61 = vadd.f32 %v4325_v57, %v4283_v56  ;;  %v4368_v21 = vpop.f32.mrf.mxu1 }
 0x354   :  { %v4420_v25 = vmax.f32 %v4408_v59, 0.0  ;;  %v4413_v3 = vadd.f32 %v4392_v32, %v4367_v60  ;;  %v4369_v24 = vadd.f32 %v4368_v21, %v4326_v61  ;;  %v4463_v27 = vmul.f32 %v4448_v46, %v4419_v10 }
 0x356   :  { %v4425_v6 = vmax.f32 %v4413_v3, 0.0  ;;  %v4414_v14 = vadd.f32 %v4396_v34, %v4369_v24  ;;  %v4464_v17 = vmul.f32 %v4452_v58, %v4420_v25  ;;  %v4474_v2 = vadd.f32 %v4473_v1, %v4463_v27 }
 0x358   :  { %v4469_v4 = vmul.f32 %v4448_v46, %v4425_v6  ;;  %v4426_v5 = vmax.f32 %v4414_v14, 0.0  ;;  %v4475_v8 = vadd.f32 %v4474_v2, %v4464_v17 }
 0x35a   :  { %4476 = vadd.xlane.f32.xlu0 %v4475_v8  ;;  %v4470_v11 = vmul.f32 %v4452_v58, %v4426_v5  ;;  %v4481_v26 = vadd.f32 %v4480_v48, %v4469_v4 }
 0x35c   :  { %v4482_v29 = vadd.f32 %v4481_v26, %v4470_v11 }
 0x35e   :  { %4483 = vadd.xlane.f32.xlu0 %v4482_v29 }
 0x3e3   :  { %v4477_v9 = vpop.xlane.xlu0 %4476 }
 0x3e4   :  { %v4487_v7 = vadd.f32 %v4486_v15, %v4477_v9 }
 0x3e6   :  { %v5088_v16 = vmul.f32 -1.442695, %v4487_v7 }
 0x3e7   :  { %v4484_v53 = vpop.xlane.xlu0 %4483 }
 0x3e8   :  { %5964 = vpow2.f32 %v5088_v16  ;;  %v4488_v52 = vadd.f32 %v4486_v15, %v4484_v53 }
 0x3ea   :  { %v5089_v55 = vmul.f32 -1.442695, %v4488_v52 }
 0x3ec   :  { %5966 = vpow2.f32 %v5089_v55 }
 0x3f5   :  { %v5965_v50 = vpop.eup %5964 }
 0x3f6   :  { %v4495_v40 = vadd.f32 1.0, %v5965_v50 }
 0x3f8   :  { %5968 = vrcp.f32 %v4495_v40 }
 0x3f9   :  { %v5967_v33 = vpop.eup %5966 }
 0x3fa   :  { %v4496_v18 = vadd.f32 1.0, %v5967_v33 }
 0x3fc   :  { %5970 = vrcp.f32 %v4496_v18 }
 0x405   :  { %v5969_v31 = vpop.eup %5968 }
 0x406   :  { %4502 = vst.msk [vmem:[%s6310_s7] sm:$0xff] %vm4501_vm0, %v5969_v31 }
 0x409   :  { %v5971_v28 = vpop.eup %5970 }
 0x40a   :  { %4503 = vst.msk [vmem:[%s6310_s7 + $0x8] sm:$0xff] %vm4501_vm0, %v5971_v28 }
 0x40b   :  { %4508 = vsyncpa [#allocation4], 1 }
 0x40c   :  { %4509 = vsyncpa [#allocation6], 1 }
 0x40d   :  { %4510 = vsyncpa [#allocation9], 1 }
 0x40e   :  { %4511 = vsyncpa [#allocation12], 1 }

</bundles_post_ra>
